<compile_context>
chip_gen: v6e
topology: v6e:2x2x1
jax: 0.10.0
libtpu: 0.0.40
codegen_flags: <defaults>
</compile_context>

<pallas_src>
import functools

import jax
import jax.numpy as jnp
from jax.experimental import pallas as pl
from jax.experimental.pallas import tpu as pltpu

_WIN = 11
_SIGMA = 1.5
_C1 = 0.01 ** 2
_C2 = 0.03 ** 2
_LIVE_F32 = 16          # recalibrated peak live f32 planes per channel (was 28)

W_SSIM, W_EDGE, W_ALIGN, W_PERC = 0.3, 0.05, 0.05, 0.01


def _gaussian_window(win, sigma):
    x = jnp.arange(win, dtype=jnp.float32) - (win - 1) / 2.0
    g = jnp.exp(-(x * x) / (2.0 * sigma * sigma))
    return g / jnp.sum(g)


def _block_band_matrix(n_blocks, block_size, g, win):
    """Block-diagonal band matrix: n_blocks independent (block_size, block_size)
    band matrices.  x @ M == per-block 1-D 'same' conv of x with g (zero pad),
    so packed channels never leak into each other."""
    half = win // 2
    n = n_blocks * block_size
    idx = jnp.arange(n)
    diff = idx[None, :] - idx[:, None] + half
    same_blk = (idx[None, :] // block_size) == (idx[:, None] // block_size)
    valid = (diff >= 0) & (diff < win) & same_blk
    return jnp.where(valid, g[jnp.clip(diff, 0, win - 1)], 0.0).astype(jnp.float32)


def _loss_kernel(sr_ref, gt_ref, kh_ref, kw_ref, out_ref, *,
                 chan_h, chan_w, p_pack, q_pack):
    # sr_ref/gt_ref: (TBS, PH, QW) super-image tile (native dtype); each
    # super-image packs p_pack x q_pack independent channels.
    # kh_ref: (PH, PH) f32, kw_ref: (QW, QW) f32 block-diag band matrices
    # (VMEM-resident: constant index_map).
    # out_ref: (1, 8, 128) f32 per-tile partial sums.
    sr = sr_ref[...].astype(jnp.float32)
    gt = gt_ref[...].astype(jnp.float32)
    kh = kh_ref[...]
    kw = kw_ref[...]
    tbs, ph, qw = sr.shape

    # ---- L1 reconstruction partial sum (mean taken in wrapper) ----
    d = sr - gt
    recon_sum = jnp.sum(jnp.abs(d))

    # ---- gradient (edge) partial sums; mask packed-channel boundaries ----
    agx = jnp.abs(d[:, :, 1:] - d[:, :, :-1])          # (TBS, PH, QW-1)
    if q_pack > 1:
        col = jax.lax.broadcasted_iota(jnp.int32, agx.shape, 2)
        keep = col != (chan_w - 1)
        for bnd in range(2, q_pack):
            keep = jnp.logical_and(keep, col != (bnd * chan_w - 1))
        agx = jnp.where(keep, agx, 0.0)
    gx_sum = jnp.sum(agx)

    agy = jnp.abs(d[:, 1:, :] - d[:, :-1, :])          # (TBS, PH-1, QW)
    if p_pack > 1:
        row = jax.lax.broadcasted_iota(jnp.int32, agy.shape, 1)
        keep = row != (chan_h - 1)
        for bnd in range(2, p_pack):
            keep = jnp.logical_and(keep, row != (bnd * chan_h - 1))
        agy = jnp.where(keep, agy, 0.0)
    gy_sum = jnp.sum(agy)

    # ---- SSIM: one stacked separable gaussian blur for all six moments ----
    # Operands stay f32: bf16 operands make s1 = e11 - mu1^2 catastrophically
    # cancel (e11 ~= mu1^2).  TODO(synk): centered-moment bf16 variant (with
    # border blur(1) correction) if MXU-bound at large H/W.
    x = jnp.concatenate([sr, gt, sr * sr, gt * gt, sr * gt], axis=0)  # (5TBS,PH,QW)
    y = jnp.dot(x.reshape(5 * tbs * ph, qw), kw,
                preferred_element_type=jnp.float32)
    y = y.reshape(5 * tbs, ph, qw)
    yt = jnp.swapaxes(y, 1, 2)                                        # (5TBS,QW,PH)
    z = jnp.dot(yt.reshape(5 * tbs * qw, ph), kh,
                preferred_element_type=jnp.float32)
    z = z.reshape(5, tbs * qw, ph)   # stays transposed; only sums needed

    mu1, mu2, e11, e22, e12 = z[0], z[1], z[2], z[3], z[4]
    mu1_sq = mu1 * mu1
    mu2_sq = mu2 * mu2
    mu1_mu2 = mu1 * mu2
    s1 = e11 - mu1_sq
    s2 = e22 - mu2_sq
    s12 = e12 - mu1_mu2
    ssim_map = ((2.0 * mu1_mu2 + _C1) * (2.0 * s12 + _C2)) / (
        (mu1_sq + mu2_sq + _C1) * (s1 + s2 + _C2))
    ssim_sum = jnp.sum(ssim_map)

    # Pack the 4 partial sums into an aligned (1, 8, 128) output tile.
    sub = jax.lax.broadcasted_iota(jnp.int32, (1, 8, 128), 1)
    out_ref[...] = (jnp.where(sub == 0, recon_sum, 0.0)
                    + jnp.where(sub == 1, gx_sum, 0.0)
                    + jnp.where(sub == 2, gy_sum, 0.0)
                    + jnp.where(sub == 3, ssim_sum, 0.0))


def _vmem_budget():
    # Per-generation VMEM budgeting: v5e/v6e have 128 MiB, v7x 64 MiB.
    try:
        cap = int(pltpu.get_tpu_info().vmem_capacity_bytes)
    except Exception:
        cap = 64 * 1024 * 1024        # conservative (v7x-sized) fallback
    vmem_limit = int(min(0.80 * cap, 100 * 1024 * 1024))
    tile_budget = int(0.42 * cap)
    return tile_budget, vmem_limit


def _pick_packing(bc, h, w):
    # Pack q channels along lanes (W axis) and p along sublanes (H axis) so the
    # blur matmuls / transpose / VPU run lane-dense even when H, W < 128.
    q = max(1, min(-(-128 // w), bc))
    p = max(1, min(-(-128 // h), max(1, bc // q)))
    return p, q


def _loss_components(sr_nchw, gt_nchw):
    b, c, h, w = sr_nchw.shape
    bc = b * c
    p, q = _pick_packing(bc, h, w)
    cpp = p * q                      # channels per super-image
    ph, qw = p * h, q * w
    n_super = -(-bc // cpp)

    tile_budget, vmem_limit = _vmem_budget()
    fixed = 2 * 4 * (ph * ph + qw * qw)          # kh/kw f32, double-buffered
    per_super = cpp * h * w * 4 * _LIVE_F32
    tbs = int(max(1, min(n_super, max(1, tile_budget - fixed) // per_super)))
    if n_super >= 2:                 # keep grid >= 2 (v7x: 2 TensorCores)
        tbs = min(tbs, -(-n_super // 2))
    grid = -(-n_super // tbs)
    total_super = grid * tbs
    n_pad = total_super * cpp - bc   # zero-padded channels (exact correction below)

    sr2 = sr_nchw.reshape(bc, h, w)  # native dtype; upcast in-kernel
    gt2 = gt_nchw.reshape(bc, h, w)
    if n_pad:
        sr2 = jnp.concatenate([sr2, jnp.zeros((n_pad, h, w), sr2.dtype)], axis=0)
        gt2 = jnp.concatenate([gt2, jnp.zeros((n_pad, h, w), gt2.dtype)], axis=0)

    def pack(x):   # (total_chan, h, w) -> (total_super, p*h, q*w) super-images
        return (x.reshape(total_super, p, q, h, w)
                 .transpose(0, 1, 3, 2, 4)
                 .reshape(total_super, ph, qw))

    srp, gtp = pack(sr2), pack(gt2)

    gwin = _gaussian_window(_WIN, _SIGMA)
    kh_big = _block_band_matrix(p, h, gwin, _WIN)   # (PH, PH)
    kw_big = _block_band_matrix(q, w, gwin, _WIN)   # (QW, QW)

    itemsize = jnp.dtype(sr_nchw.dtype).itemsize
    macs = 5 * total_super * ph * qw * (ph + qw)
    flops = 2 * macs + 40 * total_super * ph * qw
    bytes_accessed = (2 * total_super * ph * qw * itemsize
                      + 4 * (ph * ph + qw * qw) + grid * 8 * 128 * 4)

    kernel = functools.partial(_loss_kernel, chan_h=h, chan_w=w,
                               p_pack=p, q_pack=q)
    parts = pl.pallas_call(
        kernel,
        out_shape=jax.ShapeDtypeStruct((grid, 8, 128), jnp.float32),
        grid=(grid,),
        in_specs=[
            pl.BlockSpec((tbs, ph, qw), lambda i: (i, 0, 0)),
            pl.BlockSpec((tbs, ph, qw), lambda i: (i, 0, 0)),
            pl.BlockSpec((ph, ph), lambda i: (0, 0)),   # resident across steps
            pl.BlockSpec((qw, qw), lambda i: (0, 0)),   # resident across steps
        ],
        out_specs=pl.BlockSpec((1, 8, 128), lambda i: (i, 0, 0)),
        compiler_params=pltpu.CompilerParams(
            dimension_semantics=("parallel",),
            vmem_limit_bytes=vmem_limit),
        cost_estimate=pl.CostEstimate(
            flops=int(flops),
            transcendentals=int(total_super * ph * qw),
            bytes_accessed=int(bytes_accessed)),
    )(srp, gtp, kh_big, kw_big)

    sums = jnp.sum(parts[:, :4, 0], axis=0)   # reduce per-tile partials in wrapper

    n_pix = float(bc * h * w)
    loss_recon = sums[0] / n_pix
    loss_edge = (sums[1] / float(max(1, bc * h * (w - 1)))
                 + sums[2] / float(max(1, bc * (h - 1) * w)))
    # Zero-padded channels contribute ssim_map == 1.0 per pixel exactly; remove.
    ssim_mean = (sums[3] - float(n_pad * h * w)) / n_pix
    loss_ssim = 1.0 - ssim_mean
    return loss_recon, loss_edge, loss_ssim


@jax.jit
def multi_component_loss(sr_output, gt, alignment):
    """Forward pass of MultiComponentLoss (perceptual_model=None)."""
    loss_recon, loss_edge, loss_ssim = _loss_components(sr_output, gt)

    align = jnp.mean(alignment.astype(jnp.float32))
    loss_perc = jnp.float32(0.0)   # perceptual_model is None

    total = (loss_recon
             + W_SSIM * loss_ssim
             + W_EDGE * loss_edge
             + W_ALIGN * align
             + W_PERC * loss_perc)
    return total, loss_recon, loss_ssim, loss_edge, align, loss_perc


if __name__ == "__main__":
    key = jax.random.PRNGKey(0)
    k1, k2, k3 = jax.random.split(key, 3)

    B, C, H, W = 2, 4, 16, 16
    sr = jax.random.uniform(k1, (B, C, H, W), dtype=jnp.float32)
    gt = jax.random.uniform(k2, (B, C, H, W), dtype=jnp.float32)
    alignment = jax.random.uniform(k3, (B,), dtype=jnp.float32)

    total, recon, ssim, edge, align, perc = multi_component_loss(sr, gt, alignment)
    jax.block_until_ready(total)

    stats = {
        "recon": float(recon),
        "ssim": float(ssim),
        "edge": float(edge),
        "align": float(align),
        "perc": float(perc),
        "total": float(total),
    }
    # stats mirrors the dict returned by the PyTorch module
    print("KERNEL_OK")
</pallas_src>

<mosaic_0001>
module attributes {stable_mosaic.version = 11 : i64} {
  func.func @_loss_kernel(%arg0: i32, %arg1: memref<1x16x128xf32, #tpu.memory_space<vmem>>, %arg2: memref<1x16x128xf32, #tpu.memory_space<vmem>>, %arg3: memref<16x16xf32, #tpu.memory_space<vmem>>, %arg4: memref<128x128xf32, #tpu.memory_space<vmem>>, %arg5: memref<1x8x128xf32, #tpu.memory_space<vmem>>) attributes {dimension_semantics = [#tpu.dimension_semantics<parallel>], iteration_bounds = array<i64: 1>, scalar_prefetch = 0 : i64, scratch_operands = 0 : i64, tpu.core_type = #tpu.core_type<tc>, window_params = [{transform_indices = @transform_0, window_bounds = array<i64: 1, 16, 128>}, {transform_indices = @transform_1, window_bounds = array<i64: 1, 16, 128>}, {pipeline_mode = #tpu.pipeline_mode<synchronous>, transform_indices = @transform_2, window_bounds = array<i64: 16, 16>}, {pipeline_mode = #tpu.pipeline_mode<synchronous>, transform_indices = @transform_3, window_bounds = array<i64: 128, 128>}, {transform_indices = @transform_4, window_bounds = array<i64: 1, 8, 128>}]} {
    %c0 = arith.constant 0 : index
    %c0_0 = arith.constant 0 : index
    %c0_1 = arith.constant 0 : index
    %0 = vector.load %arg1[%c0, %c0_0, %c0_1] : memref<1x16x128xf32, #tpu.memory_space<vmem>>, vector<1x16x128xf32>
    %c0_2 = arith.constant 0 : index
    %c0_3 = arith.constant 0 : index
    %c0_4 = arith.constant 0 : index
    %1 = vector.load %arg2[%c0_2, %c0_3, %c0_4] : memref<1x16x128xf32, #tpu.memory_space<vmem>>, vector<1x16x128xf32>
    %c0_5 = arith.constant 0 : index
    %c0_6 = arith.constant 0 : index
    %2 = vector.load %arg3[%c0_5, %c0_6] : memref<16x16xf32, #tpu.memory_space<vmem>>, vector<16x16xf32>
    %c0_7 = arith.constant 0 : index
    %c0_8 = arith.constant 0 : index
    %3 = vector.load %arg4[%c0_7, %c0_8] : memref<128x128xf32, #tpu.memory_space<vmem>>, vector<128x128xf32>
    %4 = arith.subf %0, %1 : vector<1x16x128xf32>
    %5 = math.absf %4 : vector<1x16x128xf32>
    %6 = vector.shape_cast %5 : vector<1x16x128xf32> to vector<1x1x16x128xf32>
    %cst = arith.constant dense<0.000000e+00> : vector<1xf32>
    %7 = vector.multi_reduction <add>, %6, %cst [1, 2, 3] : vector<1x1x16x128xf32> to vector<1xf32>
    %8 = vector.shape_cast %7 : vector<1xf32> to vector<1x1x1x1xf32>
    %9 = vector.extract %8[0, 0, 0, 0] : f32 from vector<1x1x1x1xf32>
    %10 = vector.extract_strided_slice %4 {offsets = [0, 0, 1], sizes = [1, 16, 127], strides = [1, 1, 1]} : vector<1x16x128xf32> to vector<1x16x127xf32>
    %11 = vector.extract_strided_slice %4 {offsets = [0, 0, 0], sizes = [1, 16, 127], strides = [1, 1, 1]} : vector<1x16x128xf32> to vector<1x16x127xf32>
    %12 = arith.subf %10, %11 : vector<1x16x127xf32>
    %13 = math.absf %12 : vector<1x16x127xf32>
    %14 = tpu.iota {dimensions = array<i32: 2>} : vector<1x16x127xi32>
    %c15_i32 = arith.constant 15 : i32
    %15 = vector.broadcast %c15_i32 : i32 to vector<1x16x127xi32>
    %16 = arith.cmpi ne, %14, %15 : vector<1x16x127xi32>
    %c31_i32 = arith.constant 31 : i32
    %17 = vector.broadcast %c31_i32 : i32 to vector<1x16x127xi32>
    %18 = arith.cmpi ne, %14, %17 : vector<1x16x127xi32>
    %19 = arith.andi %16, %18 : vector<1x16x127xi1>
    %c47_i32 = arith.constant 47 : i32
    %20 = vector.broadcast %c47_i32 : i32 to vector<1x16x127xi32>
    %21 = arith.cmpi ne, %14, %20 : vector<1x16x127xi32>
    %22 = arith.andi %19, %21 : vector<1x16x127xi1>
    %c63_i32 = arith.constant 63 : i32
    %23 = vector.broadcast %c63_i32 : i32 to vector<1x16x127xi32>
    %24 = arith.cmpi ne, %14, %23 : vector<1x16x127xi32>
    %25 = arith.andi %22, %24 : vector<1x16x127xi1>
    %c79_i32 = arith.constant 79 : i32
    %26 = vector.broadcast %c79_i32 : i32 to vector<1x16x127xi32>
    %27 = arith.cmpi ne, %14, %26 : vector<1x16x127xi32>
    %28 = arith.andi %25, %27 : vector<1x16x127xi1>
    %c95_i32 = arith.constant 95 : i32
    %29 = vector.broadcast %c95_i32 : i32 to vector<1x16x127xi32>
    %30 = arith.cmpi ne, %14, %29 : vector<1x16x127xi32>
    %31 = arith.andi %28, %30 : vector<1x16x127xi1>
    %c111_i32 = arith.constant 111 : i32
    %32 = vector.broadcast %c111_i32 : i32 to vector<1x16x127xi32>
    %33 = arith.cmpi ne, %14, %32 : vector<1x16x127xi32>
    %34 = arith.andi %31, %33 : vector<1x16x127xi1>
    %cst_9 = arith.constant 0.000000e+00 : f32
    %35 = vector.broadcast %cst_9 : f32 to vector<1x16x127xf32>
    %36 = arith.select %34, %13, %35 : vector<1x16x127xi1>, vector<1x16x127xf32>
    %37 = vector.shape_cast %36 : vector<1x16x127xf32> to vector<1x1x16x127xf32>
    %cst_10 = arith.constant dense<0.000000e+00> : vector<1xf32>
    %38 = vector.multi_reduction <add>, %37, %cst_10 [1, 2, 3] : vector<1x1x16x127xf32> to vector<1xf32>
    %39 = vector.shape_cast %38 : vector<1xf32> to vector<1x1x1x1xf32>
    %40 = vector.extract %39[0, 0, 0, 0] : f32 from vector<1x1x1x1xf32>
    %41 = vector.extract_strided_slice %4 {offsets = [0, 1, 0], sizes = [1, 15, 128], strides = [1, 1, 1]} : vector<1x16x128xf32> to vector<1x15x128xf32>
    %42 = vector.extract_strided_slice %4 {offsets = [0, 0, 0], sizes = [1, 15, 128], strides = [1, 1, 1]} : vector<1x16x128xf32> to vector<1x15x128xf32>
    %43 = arith.subf %41, %42 : vector<1x15x128xf32>
    %44 = math.absf %43 : vector<1x15x128xf32>
    %45 = vector.shape_cast %44 : vector<1x15x128xf32> to vector<1x1x15x128xf32>
    %cst_11 = arith.constant dense<0.000000e+00> : vector<1xf32>
    %46 = vector.multi_reduction <add>, %45, %cst_11 [1, 2, 3] : vector<1x1x15x128xf32> to vector<1xf32>
    %47 = vector.shape_cast %46 : vector<1xf32> to vector<1x1x1x1xf32>
    %48 = vector.extract %47[0, 0, 0, 0] : f32 from vector<1x1x1x1xf32>
    %49 = arith.mulf %0, %0 : vector<1x16x128xf32>
    %50 = arith.mulf %1, %1 : vector<1x16x128xf32>
    %51 = arith.mulf %0, %1 : vector<1x16x128xf32>
    %52 = tpu.concatenate %0, %1, %49, %50, %51 in 0 : vector<1x16x128xf32>, vector<1x16x128xf32>, vector<1x16x128xf32>, vector<1x16x128xf32>, vector<1x16x128xf32> -> vector<5x16x128xf32>
    %53 = vector.shape_cast %52 : vector<5x16x128xf32> to vector<80x128xf32>
    %cst_12 = arith.constant dense<0.000000e+00> : vector<80x128xf32>
    %54 = tpu.matmul %53, %3, %cst_12 {dimension_numbers = #tpu.dot_dimension_numbers<[1], [0], [0], [1], [0, 0, 1, 1], [], []>} : vector<80x128xf32>, vector<128x128xf32>, vector<80x128xf32> -> vector<80x128xf32>
    %55 = vector.shape_cast %54 : vector<80x128xf32> to vector<5x16x128xf32>
    %56 = tpu.transpose %55, [0, 2, 1] : vector<5x16x128xf32> -> vector<5x128x16xf32>
    %57 = vector.shape_cast %56 : vector<5x128x16xf32> to vector<640x16xf32>
    %cst_13 = arith.constant dense<0.000000e+00> : vector<640x16xf32>
    %58 = tpu.matmul %57, %2, %cst_13 {dimension_numbers = #tpu.dot_dimension_numbers<[1], [0], [0], [1], [0, 0, 1, 1], [], []>} : vector<640x16xf32>, vector<16x16xf32>, vector<640x16xf32> -> vector<640x16xf32>
    %59 = vector.shape_cast %58 : vector<640x16xf32> to vector<5x128x16xf32>
    %60 = vector.extract_strided_slice %59 {offsets = [0, 0, 0], sizes = [1, 128, 16], strides = [1, 1, 1]} : vector<5x128x16xf32> to vector<1x128x16xf32>
    %61 = vector.shape_cast %60 : vector<1x128x16xf32> to vector<128x16xf32>
    %62 = vector.extract_strided_slice %59 {offsets = [1, 0, 0], sizes = [1, 128, 16], strides = [1, 1, 1]} : vector<5x128x16xf32> to vector<1x128x16xf32>
    %63 = vector.shape_cast %62 : vector<1x128x16xf32> to vector<128x16xf32>
    %64 = vector.extract_strided_slice %59 {offsets = [2, 0, 0], sizes = [1, 128, 16], strides = [1, 1, 1]} : vector<5x128x16xf32> to vector<1x128x16xf32>
    %65 = vector.shape_cast %64 : vector<1x128x16xf32> to vector<128x16xf32>
    %66 = vector.extract_strided_slice %59 {offsets = [3, 0, 0], sizes = [1, 128, 16], strides = [1, 1, 1]} : vector<5x128x16xf32> to vector<1x128x16xf32>
    %67 = vector.shape_cast %66 : vector<1x128x16xf32> to vector<128x16xf32>
    %68 = vector.extract_strided_slice %59 {offsets = [4, 0, 0], sizes = [1, 128, 16], strides = [1, 1, 1]} : vector<5x128x16xf32> to vector<1x128x16xf32>
    %69 = vector.shape_cast %68 : vector<1x128x16xf32> to vector<128x16xf32>
    %70 = arith.mulf %61, %61 : vector<128x16xf32>
    %71 = arith.mulf %63, %63 : vector<128x16xf32>
    %72 = arith.mulf %61, %63 : vector<128x16xf32>
    %73 = arith.subf %65, %70 : vector<128x16xf32>
    %74 = arith.subf %67, %71 : vector<128x16xf32>
    %75 = arith.subf %69, %72 : vector<128x16xf32>
    %cst_14 = arith.constant 2.000000e+00 : f32
    %76 = vector.broadcast %cst_14 : f32 to vector<128x16xf32>
    %77 = arith.mulf %76, %72 : vector<128x16xf32>
    %cst_15 = arith.constant 9.99999974E-5 : f32
    %78 = vector.broadcast %cst_15 : f32 to vector<128x16xf32>
    %79 = arith.addf %77, %78 : vector<128x16xf32>
    %cst_16 = arith.constant 2.000000e+00 : f32
    %80 = vector.broadcast %cst_16 : f32 to vector<128x16xf32>
    %81 = arith.mulf %80, %75 : vector<128x16xf32>
    %cst_17 = arith.constant 8.99999984E-4 : f32
    %82 = vector.broadcast %cst_17 : f32 to vector<128x16xf32>
    %83 = arith.addf %81, %82 : vector<128x16xf32>
    %84 = arith.mulf %79, %83 : vector<128x16xf32>
    %85 = arith.addf %70, %71 : vector<128x16xf32>
    %cst_18 = arith.constant 9.99999974E-5 : f32
    %86 = vector.broadcast %cst_18 : f32 to vector<128x16xf32>
    %87 = arith.addf %85, %86 : vector<128x16xf32>
    %88 = arith.addf %73, %74 : vector<128x16xf32>
    %cst_19 = arith.constant 8.99999984E-4 : f32
    %89 = vector.broadcast %cst_19 : f32 to vector<128x16xf32>
    %90 = arith.addf %88, %89 : vector<128x16xf32>
    %91 = arith.mulf %87, %90 : vector<128x16xf32>
    %92 = arith.divf %84, %91 : vector<128x16xf32>
    %93 = vector.shape_cast %92 : vector<128x16xf32> to vector<1x128x16xf32>
    %cst_20 = arith.constant dense<0.000000e+00> : vector<1xf32>
    %94 = vector.multi_reduction <add>, %93, %cst_20 [1, 2] : vector<1x128x16xf32> to vector<1xf32>
    %95 = vector.shape_cast %94 : vector<1xf32> to vector<1x1x1xf32>
    %96 = vector.extract %95[0, 0, 0] : f32 from vector<1x1x1xf32>
    %97 = tpu.iota {dimensions = array<i32: 1>} : vector<1x8x128xi32>
    %c0_i32 = arith.constant 0 : i32
    %98 = vector.broadcast %c0_i32 : i32 to vector<1x8x128xi32>
    %99 = arith.cmpi eq, %97, %98 : vector<1x8x128xi32>
    %cst_21 = arith.constant 0.000000e+00 : f32
    %100 = vector.broadcast %9 : f32 to vector<1x8x128xf32>
    %101 = vector.broadcast %cst_21 : f32 to vector<1x8x128xf32>
    %102 = arith.select %99, %100, %101 : vector<1x8x128xi1>, vector<1x8x128xf32>
    %c1_i32 = arith.constant 1 : i32
    %103 = vector.broadcast %c1_i32 : i32 to vector<1x8x128xi32>
    %104 = arith.cmpi eq, %97, %103 : vector<1x8x128xi32>
    %cst_22 = arith.constant 0.000000e+00 : f32
    %105 = vector.broadcast %40 : f32 to vector<1x8x128xf32>
    %106 = vector.broadcast %cst_22 : f32 to vector<1x8x128xf32>
    %107 = arith.select %104, %105, %106 : vector<1x8x128xi1>, vector<1x8x128xf32>
    %108 = arith.addf %102, %107 : vector<1x8x128xf32>
    %c2_i32 = arith.constant 2 : i32
    %109 = vector.broadcast %c2_i32 : i32 to vector<1x8x128xi32>
    %110 = arith.cmpi eq, %97, %109 : vector<1x8x128xi32>
    %cst_23 = arith.constant 0.000000e+00 : f32
    %111 = vector.broadcast %48 : f32 to vector<1x8x128xf32>
    %112 = vector.broadcast %cst_23 : f32 to vector<1x8x128xf32>
    %113 = arith.select %110, %111, %112 : vector<1x8x128xi1>, vector<1x8x128xf32>
    %114 = arith.addf %108, %113 : vector<1x8x128xf32>
    %c3_i32 = arith.constant 3 : i32
    %115 = vector.broadcast %c3_i32 : i32 to vector<1x8x128xi32>
    %116 = arith.cmpi eq, %97, %115 : vector<1x8x128xi32>
    %cst_24 = arith.constant 0.000000e+00 : f32
    %117 = vector.broadcast %96 : f32 to vector<1x8x128xf32>
    %118 = vector.broadcast %cst_24 : f32 to vector<1x8x128xf32>
    %119 = arith.select %116, %117, %118 : vector<1x8x128xi1>, vector<1x8x128xf32>
    %120 = arith.addf %114, %119 : vector<1x8x128xf32>
    %c0_25 = arith.constant 0 : index
    %c0_26 = arith.constant 0 : index
    %c0_27 = arith.constant 0 : index
    %121 = vector.load %arg5[%c0_25, %c0_26, %c0_27] : memref<1x8x128xf32, #tpu.memory_space<vmem>>, vector<1x8x128xf32>
    tpu.vector_store %arg5[%c0_25, %c0_26, %c0_27], %120 {strides = array<i32>} : memref<1x8x128xf32, #tpu.memory_space<vmem>>, vector<1x8x128xf32>,
    return
  }
  func.func @transform_0(%arg0: i32) -> (i32, i32, i32) {
    %c0_i32 = arith.constant 0 : i32
    %c0_i32_0 = arith.constant 0 : i32
    %c0_i32_1 = arith.constant 0 : i32
    return %arg0, %c0_i32, %c0_i32_0 : i32, i32, i32
  }
  func.func @transform_1(%arg0: i32) -> (i32, i32, i32) {
    %c0_i32 = arith.constant 0 : i32
    %c0_i32_0 = arith.constant 0 : i32
    %c0_i32_1 = arith.constant 0 : i32
    return %arg0, %c0_i32, %c0_i32_0 : i32, i32, i32
  }
  func.func @transform_2(%arg0: i32) -> (i32, i32) {
    %c0_i32 = arith.constant 0 : i32
    %c0_i32_0 = arith.constant 0 : i32
    %c0_i32_1 = arith.constant 0 : i32
    return %c0_i32, %c0_i32_0 : i32, i32
  }
  func.func @transform_3(%arg0: i32) -> (i32, i32) {
    %c0_i32 = arith.constant 0 : i32
    %c0_i32_0 = arith.constant 0 : i32
    %c0_i32_1 = arith.constant 0 : i32
    return %c0_i32, %c0_i32_0 : i32, i32
  }
  func.func @transform_4(%arg0: i32) -> (i32, i32, i32) {
    %c0_i32 = arith.constant 0 : i32
    %c0_i32_0 = arith.constant 0 : i32
    %c0_i32_1 = arith.constant 0 : i32
    return %arg0, %c0_i32, %c0_i32_0 : i32, i32, i32
  }
}

</mosaic_0001>

<bundles_post_ra>
// kernel: multi_component_loss.1
= control target key start
LH: loop header
LB: loop body
LE: loop exit
PB: predicated region body
PF: predicated region fallthrough
CT: control target
= control target key end

     0   :  { %vm413_vm0 = vcmask 130048   ;;  %s1876_s30 = smov 127   ;;  %vm103_vm5 = vcmask 1040384   ;;  %vm115_vm15 = vcmask 1046528   ;;  %s2484_s3 = inlined_call_operand.vmem [shape: f32[128,128], index: 3, kind: input, shape index: {}]   ;;  %s2485_s0 = inlined_call_operand.vmem [shape: f32[1,16,128], index: 0, kind: input, shape index: {}]   ;;  %s2486_s1 = inlined_call_operand.vmem [shape: f32[1,16,128], index: 1, kind: input, shape index: {}]   ;;  %s2487_s2 = inlined_call_operand.vmem [shape: f32[16,16], index: 2, kind: input, shape index: {}]   ;;  %s2488_s4 = inlined_call_operand.vmem [shape: f32[1,8,128], index: 4, kind: output, shape index: {}]  }
   0x1   :  { %v38_v0 = vld [vmem:[%s2484_s3 + $0x78] sm:$0xff]  ;;  %v37_v1 = vld [vmem:[%s2484_s3 + $0x70] sm:$0xff]  ;;  %v36_v2 = vld [vmem:[%s2484_s3 + $0x68] sm:$0xff] }
   0x2   :  { %1657 = vmatprep.subr.mxu0 %v38_v0  ;;  %v35_v3 = vld [vmem:[%s2484_s3 + $0x60] sm:$0xff]  ;;  %v34_v4 = vld [vmem:[%s2484_s3 + $0x58] sm:$0xff]  ;;  %v18_v6 = vld [vmem:[%s2485_s0 + $0x8] sm:$0xff] }
   0x3   :  { %1658 = vmatpush3.msra.mxu0 %v38_v0  ;;  %v17_v5 = vld [vmem:[%s2485_s0] sm:$0xff]  ;;  %v20_v8 = vld [vmem:[%s2486_s1 + $0x8] sm:$0xff]  ;;  %v33_v11 = vld [vmem:[%s2484_s3 + $0x50] sm:$0xff]  ;;  %v133_v23 = vmul.f32 %v18_v6, %v18_v6 }
   0x4   :  { %1659 = vmatprep.subr.mxu0 %v37_v1  ;;  %1689 = vmatprep.mubr.f32.mxu0 %v17_v5  ;;  %v19_v7 = vld [vmem:[%s2486_s1] sm:$0xff]  ;;  %v1931_v10 = vsub.f32 %v18_v6, %v20_v8  ;;  %v32_v12 = vld [vmem:[%s2484_s3 + $0x48] sm:$0xff]  ;;  %v30_v14 = vld [vmem:[%s2484_s3 + $0x38] sm:$0xff]  ;;  %v132_v22 = vmul.f32 %v17_v5, %v17_v5  ;;  %v135_v25 = vmul.f32 %v20_v8, %v20_v8 }
   0x5   :  { %1660 = vmatpush3.msra.mxu0 %v37_v1  ;;  %v1929_v9 = vsub.f32 %v17_v5, %v19_v7  ;;  %v31_v13 = vld [vmem:[%s2484_s3 + $0x40] sm:$0xff]  ;;  %v29_v15 = vld [vmem:[%s2484_s3 + $0x30] sm:$0xff]  ;;  %v28_v16 = vld [vmem:[%s2484_s3 + $0x28] sm:$0xff]  ;;  %v134_v24 = vmul.f32 %v19_v7, %v19_v7  ;;  %v136_v26 = vmul.f32 %v19_v7, %v17_v5  ;;  %v137_v27 = vmul.f32 %v20_v8, %v18_v6 }
   0x6   :  { %1661 = vmatprep.subr.mxu0 %v36_v2  ;;  %v27_v17 = vld [vmem:[%s2484_s3 + $0x20] sm:$0xff]  ;;  %v26_v18 = vld [vmem:[%s2484_s3 + $0x18] sm:$0xff]  ;;  %v25_v19 = vld [vmem:[%s2484_s3 + $0x10] sm:$0xff] }
   0x7   :  { %1662 = vmatpush3.msra.mxu0 %v36_v2  ;;  %v24_v20 = vld [vmem:[%s2484_s3 + $0x8] sm:$0xff]  ;;  %v23_v21 = vld [vmem:[%s2484_s3] sm:$0xff] }
   0x8   :  { %1663 = vmatprep.subr.mxu0 %v35_v3  ;;  %v22_v34 = vld [vmem:[%s2487_s2 + $0x8] sm:$0xff]  ;;  %v21_v35 = vld [vmem:[%s2487_s2] sm:$0xff]  ;;  %s1875_s2 = smov 1  }
   0x9   :  { %1664 = vmatpush3.msra.mxu0 %v35_v3  ;;  %1828 = vmatprep.subr.mxu1 %v22_v34 }
   0xa   :  { %1665 = vmatprep.subr.mxu0 %v34_v4  ;;  %1830 = vmatpush3.msra.mxu1 %v22_v34 }
   0xb   :  { %1666 = vmatpush3.msra.mxu0 %v34_v4  ;;  %1829 = vmatprep.subr.mxu1 %v21_v35 }
   0xc   :  { %1667 = vmatprep.subr.mxu0 %v33_v11  ;;  %1831 = vmatpush3.msra.mxu1 %v21_v35 }
   0xd   :  { %1668 = vmatpush3.msra.mxu0 %v33_v11 }
   0xe   :  { %1669 = vmatprep.subr.mxu0 %v32_v12 }
   0xf   :  { %1670 = vmatpush3.msra.mxu0 %v32_v12 }
  0x10   :  { %1671 = vmatprep.subr.mxu0 %v31_v13 }
  0x11   :  { %1672 = vmatpush3.msra.mxu0 %v31_v13 }
  0x12   :  { %1673 = vmatprep.subr.mxu0 %v30_v14 }
  0x13   :  { %1674 = vmatpush3.msra.mxu0 %v30_v14 }
  0x14   :  { %1675 = vmatprep.subr.mxu0 %v29_v15 }
  0x15   :  { %1676 = vmatpush3.msra.mxu0 %v29_v15 }
  0x16   :  { %1677 = vmatprep.subr.mxu0 %v28_v16 }
  0x17   :  { %1678 = vmatpush3.msra.mxu0 %v28_v16 }
  0x18   :  { %1679 = vmatprep.subr.mxu0 %v27_v17 }
  0x19   :  { %1680 = vmatpush3.msra.mxu0 %v27_v17 }
  0x1a   :  { %1681 = vmatprep.subr.mxu0 %v26_v18 }
  0x1b   :  { %1682 = vmatpush3.msra.mxu0 %v26_v18 }
  0x1c   :  { %1683 = vmatprep.subr.mxu0 %v25_v19 }
  0x1d   :  { %1684 = vmatpush3.msra.mxu0 %v25_v19 }
  0x1e   :  { %1685 = vmatprep.subr.mxu0 %v24_v20 }
  0x1f   :  { %1686 = vmatpush3.msra.mxu0 %v24_v20 }
  0x20   :  { %1687 = vmatprep.subr.mxu0 %v23_v21 }
  0x21   :  { %1688 = vmatpush3.msra.mxu0 %v23_v21 }
  0x22   :  { %1690 = vmatmul.mubr.f32.vlgmr.msra.gmra.mxu0 %v18_v6  ;;  %1704 = vmatprep.subr.mxu0 %v22_v34 }
  0x23   :  { %1692 = vmatprep.mubr.f32.mxu0 %v19_v7  ;;  %1705 = vmatpush3.msra.mxu0 %v22_v34 }
  0x24   :  { %1706 = vmatprep.subr.mxu0 %v21_v35 }
  0x25   :  { %1707 = vmatpush3.msra.mxu0 %v21_v35 }
  0x26   :  { %1693 = vmatmul.mubr.f32.gmra.mxu0 %v20_v8 }
  0x27   :  { %1695 = vmatprep.mubr.f32.mxu0 %v132_v22 }
  0x2a   :  { %1696 = vmatmul.mubr.f32.gmra.mxu0 %v133_v23 }
  0x2b   :  { %1698 = vmatprep.mubr.f32.mxu0 %v134_v24 }
  0x2e   :  { %1699 = vmatmul.mubr.f32.gmra.mxu0 %v135_v25 }
  0x2f   :  { %1701 = vmatprep.mubr.f32.mxu0 %v136_v26 }
  0x32   :  { %1702 = vmatmul.mubr.f32.gmra.mxu0 %v137_v27 }
  0xe2   :  { %v1691_v28 = vpop.f32.mrf.mxu0 }
  0xe4   :  { %v204_v29 = vpop.f32.mrf.mxu0 }
  0xe6   :  { %v1694_v30 = vpop.f32.mrf.mxu0 }
  0xe8   :  { %v214_v31 = vpop.f32.mrf.mxu0 }
  0xe9   :  { %285 = vxpose.xlu0.b32.start [1/2] (short) %v214_v31, 128 }
  0xea   :  { %v1697_v32 = vpop.f32.mrf.mxu0 }
  0xec   :  { %v224_v33 = vpop.f32.mrf.mxu0 }
  0xed   :  { %286 = vxpose.xlu0.b32.end [2/2] (short) %v1694_v30, 128  ;;  %317 = vxpose.xlu1.b32.start [1/2] (short) %v224_v33, 128 }
  0xee   :  { %v1700_v36 = vpop.f32.mrf.mxu0 }
  0xf0   :  { %v234_v37 = vpop.f32.mrf.mxu0 }
  0xf1   :  { %318 = vxpose.xlu1.b32.end [2/2] (short) %v1697_v32, 128 }
  0xf2   :  { %v1703_v38 = vpop.f32.mrf.mxu0 }
  0xf4   :  { %v244_v39 = vpop.f32.mrf.mxu0 }
 0x126   :  { %253 = vxpose.xlu0.b32.start [1/2] (short) %v204_v29, 128 }
 0x12a   :  { %254 = vxpose.xlu0.b32.end [2/2] (short) %v1691_v28, 128  ;;  %349 = vxpose.xlu1.b32.start [1/2] (short) %v234_v37, 128 }
 0x12e   :  { %350 = vxpose.xlu1.b32.end [2/2] (short) %v1700_v36, 128 }
 0x163   :  { %381 = vxpose.xlu0.b32.start [1/2] (short) %v244_v39, 128 }
 0x165   :  { %v1972_v40 = vpop.trf.xlu0 }
 0x167   :  { %382 = vxpose.xlu0.b32.end [2/2] (short) %v1703_v38, 128 }
 0x169   :  { %v1974_v41 = vpop.trf.xlu0  ;;  %v333_v42 = vpop.trf.xlu1 }
 0x16d   :  { %v1976_v43 = vpop.trf.xlu0  ;;  %v334_v44 = vpop.trf.xlu1 }
 0x171   :  { %v1978_v45 = vpop.trf.xlu0  ;;  %v335_v46 = vpop.trf.xlu1 }
 0x175   :  { %v1980_v47 = vpop.trf.xlu0  ;;  %v336_v48 = vpop.trf.xlu1 }
 0x179   :  { %v1982_v49 = vpop.trf.xlu0  ;;  %v337_v50 = vpop.trf.xlu1 }
 0x17d   :  { %v1984_v51 = vpop.trf.xlu0  ;;  %v338_v52 = vpop.trf.xlu1 }
 0x181   :  { %v1986_v53 = vpop.trf.xlu0  ;;  %v339_v54 = vpop.trf.xlu1 }
 0x184   :  { %55 = vrot.lane.b32.xlu1 %v1929_v9, %s1875_s2 }
 0x185   :  { %v1990_v55 = vpop.trf.xlu0  ;;  %v340_v56 = vpop.trf.xlu1 }
 0x189   :  { %v1992_v57 = vpop.trf.xlu0  ;;  %v341_v58 = vpop.trf.xlu1 }
 0x18d   :  { %v1994_v59 = vpop.trf.xlu0  ;;  %v342_v60 = vpop.trf.xlu1 }
 0x191   :  { %v1996_v61 = vpop.trf.xlu0  ;;  %v343_v62 = vpop.trf.xlu1 }
 0x195   :  { %v313_v63 = vpop.trf.xlu0  ;;  %v344_v0 = vpop.trf.xlu1 }
 0x196   :  { %1750 = vmatprep.mubr.msk.f32.mxu1 %vm413_vm0, %v313_v63 }
 0x199   :  { %v314_v1 = vpop.trf.xlu0  ;;  %v345_v2 = vpop.trf.xlu1 }
 0x19a   :  { %1751 = vmatmul.mubr.msk.f32.vlgmr.msra.gmra.mxu1 %vm413_vm0, %v314_v1 }
 0x19d   :  { %v315_v3 = vpop.trf.xlu0  ;;  %v346_v4 = vpop.trf.xlu1 }
 0x19e   :  { %1753 = vmatprep.mubr.msk.f32.mxu1 %vm413_vm0, %v315_v3 }
 0x1a1   :  { %v316_v5 = vpop.trf.xlu0  ;;  %v347_v6 = vpop.trf.xlu1 }
 0x1a2   :  { %1754 = vmatmul.mubr.msk.f32.gmra.mxu1 %vm413_vm0, %v316_v5 }
 0x1a3   :  { %1756 = vmatprep.mubr.msk.f32.mxu1 %vm413_vm0, %v333_v42 }
 0x1a5   :  { %v269_v7 = vpop.trf.xlu0  ;;  %v348_v8 = vpop.trf.xlu1 }
 0x1a6   :  { %1708 = vmatprep.mubr.msk.f32.mxu0 %vm413_vm0, %v269_v7  ;;  %1757 = vmatmul.mubr.msk.f32.gmra.mxu1 %vm413_vm0, %v334_v44  ;;  %v42_v7 = vand.u32 2147483647, %v1931_v10 }
 0x1a7   :  { %1759 = vmatprep.mubr.msk.f32.mxu1 %vm413_vm0, %v335_v46 }
 0x1a9   :  { %v270_v11 = vpop.trf.xlu0  ;;  %v365_v12 = vpop.trf.xlu1 }
 0x1aa   :  { %1709 = vmatmul.mubr.msk.f32.vlgmr.msra.gmra.mxu0 %vm413_vm0, %v270_v11  ;;  %1760 = vmatmul.mubr.msk.f32.gmra.mxu1 %vm413_vm0, %v336_v48 }
 0x1ab   :  { %1762 = vmatprep.mubr.msk.f32.mxu1 %vm413_vm0, %v337_v50 }
 0x1ad   :  { %v271_v13 = vpop.trf.xlu0  ;;  %v366_v14 = vpop.trf.xlu1 }
 0x1ae   :  { %1711 = vmatprep.mubr.msk.f32.mxu0 %vm413_vm0, %v271_v13  ;;  %1763 = vmatmul.mubr.msk.f32.gmra.mxu1 %vm413_vm0, %v338_v52 }
 0x1af   :  { %1765 = vmatprep.mubr.msk.f32.mxu1 %vm413_vm0, %v339_v54 }
 0x1b1   :  { %v272_v15 = vpop.trf.xlu0  ;;  %v367_v16 = vpop.trf.xlu1 }
 0x1b2   :  { %1712 = vmatmul.mubr.msk.f32.gmra.mxu0 %vm413_vm0, %v272_v15  ;;  %1766 = vmatmul.mubr.msk.f32.gmra.mxu1 %vm413_vm0, %v340_v56 }
 0x1b3   :  { %1768 = vmatprep.mubr.msk.f32.mxu1 %vm413_vm0, %v341_v58 }
 0x1b5   :  { %v273_v17 = vpop.trf.xlu0  ;;  %v368_v18 = vpop.trf.xlu1 }
 0x1b6   :  { %1714 = vmatprep.mubr.msk.f32.mxu0 %vm413_vm0, %v273_v17  ;;  %1769 = vmatmul.mubr.msk.f32.gmra.mxu1 %vm413_vm0, %v342_v60 }
 0x1b7   :  { %1771 = vmatprep.mubr.msk.f32.mxu1 %vm413_vm0, %v343_v62 }
 0x1b9   :  { %v274_v19 = vpop.trf.xlu0  ;;  %v369_v20 = vpop.trf.xlu1 }
 0x1ba   :  { %1715 = vmatmul.mubr.msk.f32.gmra.mxu0 %vm413_vm0, %v274_v19  ;;  %1772 = vmatmul.mubr.msk.f32.gmra.mxu1 %vm413_vm0, %v344_v0 }
 0x1bb   :  { %1774 = vmatprep.mubr.msk.f32.mxu1 %vm413_vm0, %v345_v2 }
 0x1bd   :  { %v275_v21 = vpop.trf.xlu0  ;;  %v370_v22 = vpop.trf.xlu1 }
 0x1be   :  { %1717 = vmatprep.mubr.msk.f32.mxu0 %vm413_vm0, %v275_v21  ;;  %1775 = vmatmul.mubr.msk.f32.gmra.mxu1 %vm413_vm0, %v346_v4 }
 0x1bf   :  { %1777 = vmatprep.mubr.msk.f32.mxu1 %vm413_vm0, %v347_v6  ;;  %v41_v6 = vand.u32 2147483647, %v1929_v9 }
 0x1c1   :  { %v276_v23 = vpop.trf.xlu0  ;;  %v371_v24 = vpop.trf.xlu1 }
 0x1c2   :  { %1718 = vmatmul.mubr.msk.f32.gmra.mxu0 %vm413_vm0, %v276_v23  ;;  %1778 = vmatmul.mubr.msk.f32.gmra.mxu1 %vm413_vm0, %v348_v8 }
 0x1c3   :  { %1780 = vmatprep.mubr.msk.f32.mxu1 %vm413_vm0, %v365_v12  ;;  %v43_v12 = vadd.f32 %v42_v7, %v41_v6 }
 0x1c5   :  { %v277_v25 = vpop.trf.xlu0  ;;  %v372_v26 = vpop.trf.xlu1 }
 0x1c6   :  { %1720 = vmatprep.mubr.msk.f32.mxu0 %vm413_vm0, %v277_v25  ;;  %1781 = vmatmul.mubr.msk.f32.gmra.mxu1 %vm413_vm0, %v366_v14  ;;  %v2489_v25 = vlaneseq }
 0x1c7   :  { %1783 = vmatprep.mubr.msk.f32.mxu1 %vm413_vm0, %v367_v16 }
 0x1c8   :  { %57 = vrot.lane.b32.xlu0 %v1931_v10, %s1875_s2 }
 0x1c9   :  { %v278_v27 = vpop.trf.xlu0  ;;  %v373_v28 = vpop.trf.xlu1 }
 0x1ca   :  { %1721 = vmatmul.mubr.msk.f32.gmra.mxu0 %vm413_vm0, %v278_v27  ;;  %1784 = vmatmul.mubr.msk.f32.gmra.mxu1 %vm413_vm0, %v368_v18 }
 0x1cb   :  { %1786 = vmatprep.mubr.msk.f32.mxu1 %vm413_vm0, %v369_v20 }
 0x1cd   :  { %v279_v29 = vpop.trf.xlu0  ;;  %v374_v30 = vpop.trf.xlu1 }
 0x1ce   :  { %1723 = vmatprep.mubr.msk.f32.mxu0 %vm413_vm0, %v279_v29  ;;  %1787 = vmatmul.mubr.msk.f32.gmra.mxu1 %vm413_vm0, %v370_v22 }
 0x1cf   :  { %1789 = vmatprep.mubr.msk.f32.mxu1 %vm413_vm0, %v371_v24 }
 0x1d1   :  { %v280_v31 = vpop.trf.xlu0  ;;  %v375_v32 = vpop.trf.xlu1 }
 0x1d2   :  { %1724 = vmatmul.mubr.msk.f32.gmra.mxu0 %vm413_vm0, %v280_v31  ;;  %1790 = vmatmul.mubr.msk.f32.gmra.mxu1 %vm413_vm0, %v372_v26 }
 0x1d3   :  { %1792 = vmatprep.mubr.msk.f32.mxu1 %vm413_vm0, %v373_v28 }
 0x1d5   :  { %v281_v33 = vpop.trf.xlu0  ;;  %v376_v34 = vpop.trf.xlu1 }
 0x1d6   :  { %1726 = vmatprep.mubr.msk.f32.mxu0 %vm413_vm0, %v281_v33  ;;  %1793 = vmatmul.mubr.msk.f32.gmra.mxu1 %vm413_vm0, %v374_v30  ;;  %v66_v30 = vand.u32 127, %v2489_v25 }
 0x1d7   :  { %1795 = vmatprep.mubr.msk.f32.mxu1 %vm413_vm0, %v375_v32 }
 0x1d8   :  { %vm67_vm1 = vcmp.ne.s32.totalorder %v66_v30, 15  ;;  %vm68_vm2 = vcmp.ne.s32.totalorder %v66_v30, 31  ;;  %vm70_vm4 = vcmp.ne.s32.totalorder %v66_v30, 47  ;;  %vm72_vm7 = vcmp.ne.s32.totalorder %v66_v30, 63 }
 0x1d9   :  { %v282_v35 = vpop.trf.xlu0  ;;  %v377_v36 = vpop.trf.xlu1  ;;  %vm69_vm3 = vmand %vm67_vm1, %vm68_vm2  ;;  %vm74_vm9 = vcmp.ne.s32.totalorder %v66_v30, 79  ;;  %vm76_vm11 = vcmp.ne.s32.totalorder %v66_v30, 95  ;;  %vm78_vm13 = vcmp.ne.s32.totalorder %v66_v30, 111  ;;  %vm90_vm1 = vcmask 1039360  }
 0x1da   :  { %1727 = vmatmul.mubr.msk.f32.gmra.mxu0 %vm413_vm0, %v282_v35  ;;  %1796 = vmatmul.mubr.msk.f32.gmra.mxu1 %vm413_vm0, %v376_v34  ;;  %vm71_vm6 = vmand %vm69_vm3, %vm70_vm4 }
 0x1db   :  { %1798 = vmatprep.mubr.msk.f32.mxu1 %vm413_vm0, %v377_v36  ;;  %v104_v36 = vrot.slane %v1929_v9, 7  ;;  %vm73_vm8 = vmand %vm71_vm6, %vm72_vm7 }
 0x1dc   :  { %vm75_vm10 = vmand %vm73_vm8, %vm74_vm9 }
 0x1dd   :  { %v283_v37 = vpop.trf.xlu0  ;;  %v378_v38 = vpop.trf.xlu1  ;;  %vm77_vm12 = vmand %vm75_vm10, %vm76_vm11 }
 0x1de   :  { %1729 = vmatprep.mubr.msk.f32.mxu0 %vm413_vm0, %v283_v37  ;;  %1799 = vmatmul.mubr.msk.f32.gmra.mxu1 %vm413_vm0, %v378_v38  ;;  %v105_v37 = vrot.slane %v1931_v10, 7  ;;  %vm2185_vm14 = vmand %vm77_vm12, %vm78_vm13 }
 0x1e1   :  { %v284_v39 = vpop.trf.xlu0  ;;  %v379_v42 = vpop.trf.xlu1 }
 0x1e2   :  { %1730 = vmatmul.mubr.msk.f32.gmra.mxu0 %vm413_vm0, %v284_v39  ;;  %1801 = vmatprep.mubr.msk.f32.mxu1 %vm413_vm0, %v379_v42 }
 0x1e3   :  { %1732 = vmatprep.mubr.msk.f32.mxu0 %vm413_vm0, %v1972_v40 }
 0x1e5   :  { %v380_v44 = vpop.trf.xlu1  ;;  %v397_v46 = vpop.trf.xlu0 }
 0x1e6   :  { %1733 = vmatmul.mubr.msk.f32.gmra.mxu0 %vm413_vm0, %v1974_v41  ;;  %1802 = vmatmul.mubr.msk.f32.gmra.mxu1 %vm413_vm0, %v380_v44  ;;  %v106_v44 = vsel %vm103_vm5, %v104_v36, %v105_v37 }
 0x1e7   :  { %1735 = vmatprep.mubr.msk.f32.mxu0 %vm413_vm0, %v1976_v43  ;;  %1804 = vmatprep.mubr.msk.f32.mxu1 %vm413_vm0, %v397_v46 }
 0x1e9   :  { %v398_v48 = vpop.trf.xlu0 }
 0x1ea   :  { %1736 = vmatmul.mubr.msk.f32.gmra.mxu0 %vm413_vm0, %v1978_v45  ;;  %1805 = vmatmul.mubr.msk.f32.gmra.mxu1 %vm413_vm0, %v398_v48 }
 0x1eb   :  { %1738 = vmatprep.mubr.msk.f32.mxu0 %vm413_vm0, %v1980_v47 }
 0x1ed   :  { %v399_v40 = vpop.trf.xlu0 }
 0x1ee   :  { %1739 = vmatmul.mubr.msk.f32.gmra.mxu0 %vm413_vm0, %v1982_v49  ;;  %1807 = vmatprep.mubr.msk.f32.mxu1 %vm413_vm0, %v399_v40 }
 0x1ef   :  { %1741 = vmatprep.mubr.msk.f32.mxu0 %vm413_vm0, %v1984_v51 }
 0x1f1   :  { %v400_v41 = vpop.trf.xlu0 }
 0x1f2   :  { %1742 = vmatmul.mubr.msk.f32.gmra.mxu0 %vm413_vm0, %v1986_v53  ;;  %1808 = vmatmul.mubr.msk.f32.gmra.mxu1 %vm413_vm0, %v400_v41  ;;  %v109_v41 = vsub.f32 %v1929_v9, %v104_v36 }
 0x1f3   :  { %1744 = vmatprep.mubr.msk.f32.mxu0 %vm413_vm0, %v1990_v55 }
 0x1f5   :  { %v401_v43 = vpop.trf.xlu0 }
 0x1f6   :  { %1745 = vmatmul.mubr.msk.f32.gmra.mxu0 %vm413_vm0, %v1992_v57  ;;  %1810 = vmatprep.mubr.msk.f32.mxu1 %vm413_vm0, %v401_v43  ;;  %v56_v45 = vpop.permute.xlu1 %55  ;;  %v110_v43 = vsub.f32 %v1931_v10, %v106_v44 }
 0x1f7   :  { %1747 = vmatprep.mubr.msk.f32.mxu0 %vm413_vm0, %v1994_v59  ;;  %v61_v47 = vsub.f32 %v1929_v9, %v56_v45 }
 0x1f9   :  { %v402_v49 = vpop.trf.xlu0  ;;  %v63_v50 = vand.u32 2147483647, %v61_v47 }
 0x1fa   :  { %1748 = vmatmul.mubr.msk.f32.gmra.mxu0 %vm413_vm0, %v1996_v61  ;;  %1811 = vmatmul.mubr.msk.f32.gmra.mxu1 %vm413_vm0, %v402_v49 }
 0x1fb   :  { %82 = vrot.lane.b32.xlu1 %v63_v50, %s1876_s30 }
 0x1fd   :  { %v403_v51 = vpop.trf.xlu0 }
 0x1fe   :  { %1813 = vmatprep.mubr.msk.f32.mxu1 %vm413_vm0, %v403_v51  ;;  %v111_v51 = vand.u32 2147483647, %v109_v41 }
 0x201   :  { %v404_v52 = vpop.trf.xlu0 }
 0x202   :  { %1814 = vmatmul.mubr.msk.f32.gmra.mxu1 %vm413_vm0, %v404_v52  ;;  %v112_v52 = vand.u32 2147483647, %v110_v43 }
 0x205   :  { %v405_v53 = vpop.trf.xlu0 }
 0x206   :  { %1816 = vmatprep.mubr.msk.f32.mxu1 %vm413_vm0, %v405_v53 }
 0x209   :  { %v406_v54 = vpop.trf.xlu0 }
 0x20a   :  { %1817 = vmatmul.mubr.msk.f32.gmra.mxu1 %vm413_vm0, %v406_v54 }
 0x20d   :  { %v407_v55 = vpop.trf.xlu0 }
 0x20e   :  { %1819 = vmatprep.mubr.msk.f32.mxu1 %vm413_vm0, %v407_v55  ;;  %v116_v55 = vrot.slane %v111_v51, 1 }
 0x211   :  { %v408_v56 = vpop.trf.xlu0 }
 0x212   :  { %1820 = vmatmul.mubr.msk.f32.gmra.mxu1 %vm413_vm0, %v408_v56  ;;  %v117_v56 = vrot.slane %v112_v52, 1 }
 0x214   :  { %v118_v37 = vsel %vm115_vm15, %v116_v55, %v117_v56  ;;  %v121_v44 = vsel %vm115_vm15, %v117_v56, 0.0 }
 0x215   :  { %v409_v57 = vpop.trf.xlu0 }
 0x216   :  { %1822 = vmatprep.mubr.msk.f32.mxu1 %vm413_vm0, %v409_v57 }
 0x219   :  { %v410_v58 = vpop.trf.xlu0 }
 0x21a   :  { %1823 = vmatmul.mubr.msk.f32.gmra.mxu1 %vm413_vm0, %v410_v58 }
 0x21d   :  { %v411_v59 = vpop.trf.xlu0 }
 0x21e   :  { %1825 = vmatprep.mubr.msk.f32.mxu1 %vm413_vm0, %v411_v59 }
 0x221   :  { %v412_v60 = vpop.trf.xlu0 }
 0x222   :  { %1826 = vmatmul.mubr.msk.f32.gmra.mxu1 %vm413_vm0, %v412_v60 }
 0x23a   :  { %v58_v61 = vpop.permute.xlu0 %57 }
 0x23b   :  { %v62_v62 = vsub.f32 %v1931_v10, %v58_v61  ;;  %v2516_v10 = vmov 0 }
 0x23c   :  { %v2517_v10 = vsel %vm2185_vm14, 4294967295, %v2516_v10 }
 0x23d   :  { %v64_v63 = vand.u32 2147483647, %v62_v62  ;;  %2518 = vst [vmem:[#allocation14_spill] sm:$0xff] %v2517_v10 }
 0x23f   :  { %84 = vrot.lane.b32.xlu1 %v64_v63, %s1876_s30 }
 0x25a   :  { %v2094_v0 = vpop.f32.mrf.mxu1 }
 0x25b   :  { %v1148_v7 = vmul.f32 %v2094_v0, %v2094_v0 }
 0x25c   :  { %v2096_v1 = vpop.f32.mrf.mxu1 }
 0x25d   :  { %v1147_v41 = vmul.f32 %v2096_v1, %v2096_v1 }
 0x262   :  { %v2098_v2 = vpop.f32.mrf.mxu1 }
 0x263   :  { %44 = vadd.xlane.f32.xlu1 %v43_v12  ;;  %v2217_v43 = vmul.f32 %v2098_v2, %v2098_v2 }
 0x264   :  { %v2100_v3 = vpop.f32.mrf.mxu1 }
 0x265   :  { %2504 = vst [vmem:[#allocation2_spill] sm:$0xff] %v2100_v3  ;;  %v2221_v51 = vmul.f32 %v2100_v3, %v2100_v3 }
 0x266   :  { %v2102_v4 = vpop.f32.mrf.mxu1 }
 0x268   :  { %v2104_v5 = vpop.f32.mrf.mxu1 }
 0x26a   :  { %v2108_v8 = vpop.f32.mrf.mxu1  ;;  %v2120_v17 = vpop.f32.mrf.mxu0 }
 0x26b   :  { %v2191_v58 = vmul.f32 %v2120_v17, %v2120_v17 }
 0x26c   :  { %v2110_v11 = vpop.f32.mrf.mxu1  ;;  %v2126_v20 = vpop.f32.mrf.mxu0 }
 0x26d   :  { %v83_v57 = vpop.permute.xlu1 %82  ;;  %v2195_v59 = vmul.f32 %v2126_v20, %v2126_v20 }
 0x26e   :  { %v2112_v13 = vpop.f32.mrf.mxu1  ;;  %v88_v6 = vsel %vm2185_vm14, %v83_v57, 0.0 }
 0x26f   :  { %v2232_v10 = vsel %vm90_vm1, %v88_v6, 0.0 }
 0x270   :  { %v2114_v14 = vpop.f32.mrf.mxu1  ;;  %2521 = vst [vmem:[#allocation17_spill] sm:$0xff] %v2232_v10 }
 0x272   :  { %v2116_v15 = vpop.f32.mrf.mxu1  ;;  %v2130_v22 = vpop.f32.mrf.mxu0 }
 0x273   :  { %v2201_v62 = vmul.f32 %v2130_v22, %v2130_v22 }
 0x274   :  { %v2118_v16 = vpop.f32.mrf.mxu1  ;;  %v2136_v26 = vpop.f32.mrf.mxu0 }
 0x275   :  { %v2205_v63 = vmul.f32 %v2136_v26, %v2136_v26 }
 0x276   :  { %v2122_v18 = vpop.f32.mrf.mxu1 }
 0x278   :  { %v2124_v19 = vpop.f32.mrf.mxu1 }
 0x27a   :  { %v2128_v21 = vpop.f32.mrf.mxu1  ;;  %v2140_v28 = vpop.f32.mrf.mxu0 }
 0x27b   :  { %2505 = vst [vmem:[#allocation3_spill] sm:$0xff] %v2128_v21  ;;  %v2229_v55 = vmul.f32 %v2140_v28, %v2140_v28 }
 0x27c   :  { %v2132_v23 = vpop.f32.mrf.mxu1  ;;  %v2147_v32 = vpop.f32.mrf.mxu0 }
 0x27d   :  { %2506 = vst [vmem:[#allocation4_spill] sm:$0xff] %v2132_v23  ;;  %v2240_v57 = vmul.f32 %v2147_v32, %v2147_v32 }
 0x27e   :  { %v2134_v24 = vpop.f32.mrf.mxu1 }
 0x280   :  { %v2138_v27 = vpop.f32.mrf.mxu1 }
 0x282   :  { %v2142_v29 = vpop.f32.mrf.mxu1  ;;  %v2151_v34 = vpop.f32.mrf.mxu0 }
 0x283   :  { %v2246_v25 = vmul.f32 %v2151_v34, %v2151_v34 }
 0x284   :  { %v2145_v31 = vpop.f32.mrf.mxu1  ;;  %v2159_v39 = vpop.f32.mrf.mxu0 }
 0x285   :  { %2507 = vst [vmem:[#allocation5_spill] sm:$0xff] %v2159_v39  ;;  %v2254_v3 = vmul.f32 %v2159_v39, %v2159_v39 }
 0x286   :  { %v2149_v33 = vpop.f32.mrf.mxu1 }
 0x288   :  { %v2153_v35 = vpop.f32.mrf.mxu1 }
 0x28a   :  { %v2157_v38 = vpop.f32.mrf.mxu1  ;;  %v2163_v46 = vpop.f32.mrf.mxu0 }
 0x28b   :  { %2508 = vst [vmem:[#allocation6_spill] sm:$0xff] %v2163_v46 }
 0x28c   :  { %v2161_v42 = vpop.f32.mrf.mxu1  ;;  %v2171_v45 = vpop.f32.mrf.mxu0 }
 0x28d   :  { %2509 = vst [vmem:[#allocation7_spill] sm:$0xff] %v2171_v45 }
 0x28e   :  { %v2165_v48 = vpop.f32.mrf.mxu1 }
 0x290   :  { %v2167_v40 = vpop.f32.mrf.mxu1 }
 0x292   :  { %v2173_v47 = vpop.f32.mrf.mxu1  ;;  %v2175_v49 = vpop.f32.mrf.mxu0 }
 0x293   :  { %2510 = vst [vmem:[#allocation8_spill] sm:$0xff] %v2173_v47  ;;  %2511 = vst [vmem:[#allocation9_spill] sm:$0xff] %v2175_v49 }
 0x294   :  { %v2177_v50 = vpop.f32.mrf.mxu1  ;;  %v2181_v54 = vpop.f32.mrf.mxu0 }
 0x295   :  { %2512 = vst [vmem:[#allocation10_spill] sm:$0xff] %v2177_v50  ;;  %2514 = vst [vmem:[#allocation12_spill] sm:$0xff] %v2181_v54 }
 0x296   :  { %v2179_v53 = vpop.f32.mrf.mxu1 }
 0x297   :  { %2513 = vst [vmem:[#allocation11_spill] sm:$0xff] %v2179_v53  ;;  %v2258_v53 = vmul.f32 %v2163_v46, %v2163_v46  ;;  %v2273_v46 = vmul.f32 %v2181_v54, %v2181_v54 }
 0x298   :  { %v2183_v9 = vpop.f32.mrf.mxu1 }
 0x299   :  { %2515 = vst [vmem:[#allocation13_spill] sm:$0xff] %v2183_v9  ;;  %2524 = vst [vmem:[#allocation20_spill] sm:$0xff] %v2273_v46 }
 0x29a   :  { %v1728_v60 = vpop.f32.mrf.mxu0  ;;  %v2197_v61 = vpop.f32.mrf.mxu1 }
 0x29b   :  { %2519 = vst [vmem:[#allocation15_spill] sm:$0xff] %v2197_v61  ;;  %v1132_v12 = vmul.f32 %v1728_v60, %v1728_v60  ;;  %v2242_v61 = vadd.f32 %v121_v44, %v118_v37  ;;  %v2249_v9 = vmul.f32 %v2094_v0, %v1728_v60  ;;  %v2265_v0 = vmul.f32 %v2171_v45, %v2171_v45 }
 0x29c   :  { %v780_v30 = vpop.f32.mrf.mxu0  ;;  %v2211_v36 = vpop.f32.mrf.mxu1 }
 0x29d   :  { %2520 = vst [vmem:[#allocation16_spill] sm:$0xff] %v2211_v36  ;;  %v1131_v52 = vmul.f32 %v780_v30, %v780_v30  ;;  %2522 = vst [vmem:[#allocation18_spill] sm:$0xff] %v2242_v61  ;;  %v1180_v6 = vsub.f32 %v2134_v24, %v1132_v12  ;;  %v2269_v24 = vmul.f32 %v2175_v49, %v2175_v49  ;;  %v1228_v39 = vmul.f32 2.0, %v2249_v9 }
 0x29e   :  { %v1800_v56 = vpop.f32.mrf.mxu1  ;;  %2523 = vst [vmem:[#allocation19_spill] sm:$0xff] %v2249_v9  ;;  %v1308_v50 = vadd.f32 %v1148_v7, %v1132_v12  ;;  %v2279_v45 = vmul.f32 %v2096_v1, %v780_v30 }
 0x29f   :  { %v1196_v10 = vsub.f32 %v1800_v56, %v1148_v7  ;;  %v1179_v37 = vsub.f32 %v2138_v27, %v1131_v52  ;;  %v1307_v47 = vadd.f32 %v1147_v41, %v1131_v52 }
 0x2a0   :  { %v1020_v36 = vpop.f32.mrf.mxu1  ;;  %2525 = vst [vmem:[#allocation21_spill] sm:$0xff] %v2279_v45  ;;  %v1324_v61 = vadd.f32 0.0001, %v1308_v50 }
 0x2a1   :  { %v1195_v44 = vsub.f32 %v1020_v36, %v1147_v41  ;;  %v1340_v60 = vadd.f32 %v1196_v10, %v1180_v6  ;;  %v1323_v9 = vadd.f32 0.0001, %v1307_v47 }
 0x2a2   :  { %v1731_v56 = vpop.f32.mrf.mxu0 }
 0x2a3   :  { %v1339_v27 = vadd.f32 %v1195_v44, %v1179_v37  ;;  %v1134_v36 = vmul.f32 %v1731_v56, %v1731_v56  ;;  %v1356_v12 = vadd.f32 0.0009, %v1340_v60  ;;  %v2298_v60 = vadd.f32 0.0001, %v1228_v39 }
 0x2a4   :  { %v2281_v49 = vpop.f32.mrf.mxu0  ;;  %v2301_v37 = vmul.f32 2.0, %v2279_v45 }
 0x2a5   :  { %2526 = vst [vmem:[#allocation22_spill] sm:$0xff] %v2281_v49  ;;  %v1355_v30 = vadd.f32 0.0009, %v1339_v27  ;;  %v1310_v41 = vadd.f32 %v2217_v43, %v1134_v36  ;;  %v1133_v6 = vmul.f32 %v2281_v49, %v2281_v49  ;;  %2527 = vst [vmem:[#allocation23_spill] sm:$0xff] %v2298_v60  ;;  %v2304_v27 = vmul.f32 %v2098_v2, %v1731_v56 }
 0x2a6   :  { %v1734_v52 = vpop.f32.mrf.mxu0  ;;  %v1803_v44 = vpop.f32.mrf.mxu1  ;;  %v1372_v54 = vmul.f32 %v1356_v12, %v1324_v61  ;;  %v1182_v21 = vsub.f32 %v2142_v29, %v1134_v36  ;;  %v2528_v29 = vsub.f32 %v2102_v4, %v2191_v58  ;;  %v2529_v4 = vsub.f32 %v2104_v5, %v2195_v59 }
 0x2a7   :  { %v1136_v7 = vmul.f32 %v1734_v52, %v1734_v52  ;;  %v1371_v49 = vmul.f32 %v1355_v30, %v1323_v9  ;;  %v1326_v46 = vadd.f32 0.0001, %v1310_v41  ;;  %v1198_v39 = vsub.f32 %v1803_v44, %v2217_v43 }
 0x2a8   :  { %v800_v1 = vpop.f32.mrf.mxu0  ;;  %v1030_v23 = vpop.f32.mrf.mxu1  ;;  %v1181_v47 = vsub.f32 %v2145_v31, %v1133_v6  ;;  %v1309_v2 = vadd.f32 %v2221_v51, %v1133_v6  ;;  %v1152_v56 = vmul.f32 %v1734_v52, %v2120_v17  ;;  %1843 = vrcp.f32 %v1372_v54 }
 0x2a9   :  { %v1184_v10 = vsub.f32 %v2149_v33, %v1136_v7  ;;  %v1296_v50 = vadd.f32 %v1136_v7, %v2191_v58  ;;  %v1135_v60 = vmul.f32 %v800_v1, %v800_v1  ;;  %v1342_v33 = vadd.f32 %v1198_v39, %v1182_v21 }
 0x2aa   :  { %v1737_v45 = vpop.f32.mrf.mxu0  ;;  %v1197_v7 = vsub.f32 %v1030_v23, %v2221_v51  ;;  %v1151_v31 = vmul.f32 %v800_v1, %v2126_v20  ;;  %v1806_v6 = vpop.f32.mrf.mxu1  ;;  %1845 = vrcp.f32 %v1371_v49  ;;  %v1216_v51 = vmul.f32 2.0, %v1152_v56 }
 0x2ab   :  { %v1328_v61 = vadd.f32 %v1184_v10, %v2528_v29  ;;  %v1183_v36 = vsub.f32 %v2153_v35, %v1135_v60  ;;  %v1295_v9 = vadd.f32 %v1135_v60, %v2195_v59  ;;  %v1312_v12 = vadd.f32 0.0001, %v1296_v50 }
 0x2ac   :  { %v810_v43 = vpop.f32.mrf.mxu0  ;;  %v1138_v41 = vmul.f32 %v1737_v45, %v1737_v45  ;;  %v1358_v17 = vadd.f32 0.0009, %v1342_v33  ;;  %v1341_v21 = vadd.f32 %v1197_v7, %v1181_v47  ;;  %v1325_v35 = vadd.f32 0.0001, %v1309_v2  ;;  %v1040_v59 = vpop.f32.mrf.mxu1 }
 0x2ad   :  { %v1344_v30 = vadd.f32 0.0009, %v1328_v61  ;;  %v1327_v58 = vadd.f32 %v1183_v36, %v2529_v4  ;;  %v1311_v44 = vadd.f32 0.0001, %v1295_v9  ;;  %v1215_v1 = vmul.f32 2.0, %v1151_v31 }
 0x2ae   :  { %v1740_v10 = vpop.f32.mrf.mxu0  ;;  %v1186_v23 = vsub.f32 %v2157_v38, %v1138_v41  ;;  %v1298_v20 = vadd.f32 %v1138_v41, %v2201_v62  ;;  %v2530_v54 = vsub.f32 %v2108_v8, %v2201_v62  ;;  %v1200_v5 = vsub.f32 %v1806_v6, %v1152_v56 }
 0x2af   :  { %v1360_v52 = vmul.f32 %v1344_v30, %v1312_v12  ;;  %v1343_v60 = vadd.f32 0.0009, %v1327_v58  ;;  %v1374_v47 = vmul.f32 %v1358_v17, %v1326_v46  ;;  %v1357_v2 = vadd.f32 0.0009, %v1341_v21 }
 0x2b0   :  { %v1330_v50 = vadd.f32 %v1186_v23, %v2530_v54  ;;  %v820_v39 = vpop.f32.mrf.mxu0  ;;  %v2329_v29 = vmul.f32 %v1737_v45, %v2130_v22  ;;  %v1314_v38 = vadd.f32 0.0001, %v1298_v20  ;;  %v1248_v33 = vmul.f32 2.0, %v1200_v5 }
 0x2b1   :  { %1847 = vrcp.f32 %v1360_v52  ;;  %v1359_v49 = vmul.f32 %v1343_v60, %v1311_v44  ;;  %v1137_v36 = vmul.f32 %v810_v43, %v810_v43  ;;  %v2332_v9 = vmul.f32 %v810_v43, %v2136_v26 }
 0x2b2   :  { %v1346_v61 = vadd.f32 0.0009, %v1330_v50  ;;  %v1199_v7 = vsub.f32 %v1040_v59, %v1151_v31  ;;  %v1140_v8 = vmul.f32 %v1740_v10, %v1740_v10  ;;  %v1232_v62 = vadd.f32 0.0001, %v1216_v51  ;;  %v1743_v30 = vpop.f32.mrf.mxu0  ;;  %v1809_v44 = vpop.f32.mrf.mxu1 }
 0x2b3   :  { %1849 = vrcp.f32 %v1359_v49  ;;  %v1231_v56 = vadd.f32 0.0001, %v1215_v1  ;;  %v1185_v46 = vsub.f32 %v2161_v42, %v1137_v36  ;;  %v1218_v41 = vmul.f32 2.0, %v2329_v29 }
 0x2b4   :  { %v1362_v12 = vmul.f32 %v1346_v61, %v1314_v38  ;;  %v1297_v22 = vadd.f32 %v1137_v36, %v2205_v63  ;;  %v1247_v45 = vmul.f32 2.0, %v1199_v7  ;;  %v2338_v6 = vmul.f32 %v1740_v10, %v2140_v28  ;;  %v830_v23 = vpop.f32.mrf.mxu0 }
 0x2b5   :  { %1851 = vrcp.f32 %v1374_v47  ;;  %v2340_v17 = vmul.f32 %v1357_v2, %v1325_v35  ;;  %v2531_v26 = vsub.f32 %v2110_v11, %v2205_v63  ;;  %v1188_v31 = vsub.f32 %v2165_v48, %v1140_v8  ;;  %v2355_v60 = vpop.eup %1843  ;;  %v2533_v47 = vld [vmem:[#allocation8_spill] sm:$0xff] }
 0x2b6   :  { %1853 = vrcp.f32 %v1362_v12  ;;  %v1264_v42 = vadd.f32 0.0009, %v1248_v33  ;;  %v1217_v4 = vmul.f32 2.0, %v2332_v9  ;;  %v1300_v58 = vadd.f32 %v1140_v8, %v2229_v55  ;;  %v1746_v61 = vpop.f32.mrf.mxu0  ;;  %v1050_v12 = vpop.f32.mrf.mxu1 }
 0x2b7   :  { %v1329_v43 = vadd.f32 %v1185_v46, %v2531_v26  ;;  %v1313_v21 = vadd.f32 0.0001, %v1297_v22  ;;  %v2532_v28 = vsub.f32 %v2112_v13, %v2229_v55  ;;  %v1139_v35 = vmul.f32 %v820_v39, %v820_v39  ;;  %v2358_v5 = vpop.eup %1845 }
 0x2b8   :  { %v1263_v51 = vadd.f32 0.0009, %v1247_v45  ;;  %v1220_v11 = vmul.f32 2.0, %v2338_v6  ;;  %v2353_v63 = vmul.f32 %v820_v39, %v2147_v32  ;;  %v1142_v48 = vmul.f32 %v1743_v30, %v1743_v30 }
 0x2b9   :  { %v1345_v52 = vadd.f32 0.0009, %v1329_v43  ;;  %v1332_v10 = vadd.f32 %v1188_v31, %v2532_v28  ;;  %v1316_v1 = vadd.f32 0.0001, %v1300_v58  ;;  %v1187_v50 = vsub.f32 %v2167_v40, %v1139_v35  ;;  %v2536_v31 = vld [vmem:[#allocation5_spill] sm:$0xff]  ;;  %v840_v58 = vpop.f32.mrf.mxu0 }
 0x2ba   :  { %v1234_v13 = vadd.f32 0.0001, %v1218_v41  ;;  %v1219_v55 = vmul.f32 2.0, %v2353_v63  ;;  %v2362_v59 = vmul.f32 %v1743_v30, %v2151_v34  ;;  %v1190_v32 = vsub.f32 %v2533_v47, %v1142_v48  ;;  %v2379_v26 = vpop.f32.mrf.mxu1 }
 0x2bb   :  { %v1361_v20 = vmul.f32 %v1345_v52, %v1313_v21  ;;  %v1348_v54 = vadd.f32 0.0009, %v1332_v10  ;;  %v1299_v49 = vadd.f32 %v1139_v35, %v2240_v57  ;;  %v2534_v2 = vsub.f32 %v2114_v14, %v2240_v57  ;;  %v2537_v52 = vld [vmem:[#allocation10_spill] sm:$0xff] }
 0x2bc   :  { %v1280_v33 = vmul.f32 %v1264_v42, %v1232_v62  ;;  %v1233_v36 = vadd.f32 0.0001, %v1217_v4  ;;  %v1279_v7 = vmul.f32 %v1263_v51, %v1231_v56  ;;  %v1302_v8 = vadd.f32 %v1142_v48, %v2246_v25 }
 0x2bd   :  { %1855 = vrcp.f32 %v1361_v20  ;;  %v1364_v39 = vmul.f32 %v1348_v54, %v1316_v1  ;;  %v1331_v38 = vadd.f32 %v1187_v50, %v2534_v2  ;;  %v2370_v34 = vadd.f32 0.0001, %v1220_v11  ;;  %v2395_v1 = vpop.f32.mrf.mxu1 }
 0x2be   :  { %v1848_v40 = vpop.eup %1847  ;;  %v2372_v46 = vadd.f32 0.0001, %v1219_v55  ;;  %v2535_v41 = vsub.f32 %v2116_v15, %v2246_v25  ;;  %v1222_v14 = vmul.f32 2.0, %v2362_v59  ;;  %v1202_v57 = vsub.f32 %v1809_v44, %v2329_v29 }
 0x2bf   :  { %v1347_v30 = vadd.f32 0.0009, %v1331_v38  ;;  %v1378_v45 = vmul.f32 %v1848_v40, %v1280_v33  ;;  %v1141_v62 = vmul.f32 %v830_v23, %v830_v23  ;;  %1857 = vrcp.f32 %v1364_v39  ;;  %v1749_v39 = vpop.f32.mrf.mxu0  ;;  %v2539_v40 = vld [vmem:[#allocation6_spill] sm:$0xff] }
 0x2c0   :  { %v1334_v22 = vadd.f32 %v1190_v32, %v2535_v41  ;;  %v1850_v56 = vpop.eup %1849  ;;  %v1315_v43 = vadd.f32 0.0001, %v1299_v49  ;;  %v2382_v42 = vmul.f32 %v830_v23, %v2536_v31  ;;  %v1201_v4 = vsub.f32 %v1050_v12, %v2332_v9 }
 0x2c1   :  { %v1376_v21 = vmul.f32 %v1850_v56, %v1279_v7  ;;  %v1318_v15 = vadd.f32 0.0001, %v1302_v8  ;;  %v1250_v25 = vmul.f32 2.0, %v1202_v57  ;;  %v1189_v28 = vsub.f32 %v2537_v52, %v1141_v62  ;;  %v2540_v8 = vld [vmem:[#allocation7_spill] sm:$0xff]  ;;  %v2542_v56 = vld [vmem:[#allocation13_spill] sm:$0xff] }
 0x2c2   :  { %v1363_v10 = vmul.f32 %v1347_v30, %v1315_v43  ;;  %v1350_v35 = vadd.f32 0.0009, %v1334_v22  ;;  %v1301_v29 = vadd.f32 %v1141_v62, %v2254_v3  ;;  %v1249_v51 = vmul.f32 2.0, %v1201_v4  ;;  %v2387_v11 = vpop.eup %1851  ;;  %v2402_v7 = vpop.f32.mrf.mxu1  ;;  %v2541_v22 = vld [vmem:[#allocation11_spill] sm:$0xff] }
 0x2c3   :  { %v1408_v48 = vsel %vm413_vm0, %v1378_v45, 0.0  ;;  %v2390_v44 = vadd.f32 0.0001, %v1222_v14  ;;  %v1266_v23 = vadd.f32 0.0009, %v1250_v25  ;;  %v2538_v9 = vsub.f32 %v2118_v16, %v2254_v3  ;;  %v1854_v54 = vpop.eup %1853  ;;  %v850_v25 = vpop.f32.mrf.mxu0 }
 0x2c4   :  { %v1407_v50 = vsel %vm413_vm0, %v1376_v21, 0.0  ;;  %v1221_v55 = vmul.f32 2.0, %v2382_v42  ;;  %v1317_v47 = vadd.f32 0.0001, %v1301_v29  ;;  %v1265_v32 = vadd.f32 0.0009, %v1249_v51  ;;  %v1070_v52 = vpop.f32.mrf.mxu1 }
 0x2c5   :  { %v1333_v20 = vadd.f32 %v1189_v28, %v2538_v9  ;;  %v1282_v49 = vmul.f32 %v1266_v23, %v1234_v13  ;;  %v1144_v38 = vmul.f32 %v1746_v61, %v1746_v61  ;;  %v2400_v33 = vmul.f32 %v1746_v61, %v2539_v40  ;;  %v2545_v23 = vld [vmem:[#allocation15_spill] sm:$0xff] }
 0x2c6   :  { %1859 = vrcp.f32 %v1363_v10  ;;  %v1366_v3 = vmul.f32 %v1350_v35, %v1318_v15  ;;  %v1143_v16 = vmul.f32 %v840_v58, %v840_v58  ;;  %v2405_v12 = vmul.f32 %v840_v58, %v2540_v8 }
 0x2c7   :  { %v1349_v2 = vadd.f32 0.0009, %v1333_v20  ;;  %v1382_v30 = vmul.f32 %v1854_v54, %v1282_v49  ;;  %v1192_v45 = vsub.f32 %v2541_v22, %v1144_v38  ;;  %v1146_v14 = vmul.f32 %v1749_v39, %v1749_v39 }
 0x2c8   :  { %v1409_v57 = vadd.f32 %v1408_v48, %v1407_v50  ;;  %v1281_v13 = vmul.f32 %v1265_v32, %v1233_v36  ;;  %v1304_v62 = vadd.f32 %v1144_v38, %v2258_v53  ;;  %v1191_v61 = vsub.f32 %v2542_v56, %v1143_v16 }
 0x2c9   :  { %v1365_v41 = vmul.f32 %v1349_v2, %v1317_v47  ;;  %v2410_v31 = vadd.f32 0.0001, %v1221_v55  ;;  %v1224_v4 = vmul.f32 2.0, %v2400_v33  ;;  %v2543_v58 = vsub.f32 %v2122_v18, %v2258_v53 }
 0x2ca   :  { %v1856_v43 = vpop.eup %1855  ;;  %v1303_v15 = vadd.f32 %v1143_v16, %v2265_v0  ;;  %v1412_v28 = vsel %vm413_vm0, %v1382_v30, 0.0  ;;  %v1223_v10 = vmul.f32 2.0, %v2405_v12  ;;  %v1320_v35 = vadd.f32 0.0001, %v1304_v62  ;;  %v1818_v18 = vpop.f32.mrf.mxu1  ;;  %v2550_v62 = vld [vmem:[#allocation20_spill] sm:$0xff] }
 0x2cb   :  { %v1336_v21 = vadd.f32 %v1192_v45, %v2543_v58  ;;  %1861 = vrcp.f32 %v1365_v41  ;;  %v1380_v36 = vmul.f32 %v1856_v43, %v1281_v13  ;;  %v2544_v51 = vsub.f32 %v2124_v19, %v2265_v0  ;;  %v2546_v0 = vld [vmem:[#allocation3_spill] sm:$0xff]  ;;  %v2548_v41 = vld [vmem:[#allocation9_spill] sm:$0xff]  ;;  %v2549_v45 = vld [vmem:[#allocation16_spill] sm:$0xff] }
 0x2cc   :  { %v1194_v9 = vsub.f32 %v2545_v23, %v1146_v14  ;;  %v1306_v20 = vadd.f32 %v1146_v14, %v2269_v24  ;;  %v1204_v54 = vsub.f32 %v2379_v26, %v2338_v6  ;;  %v1145_v50 = vmul.f32 %v850_v25, %v850_v25  ;;  %v1858_v55 = vpop.eup %1857  ;;  %v1080_v26 = vpop.f32.mrf.mxu1  ;;  %v2552_v43 = vld [vmem:[#allocation4_spill] sm:$0xff] }
 0x2cd   :  { %v1352_v29 = vadd.f32 0.0009, %v1336_v21  ;;  %v1335_v48 = vadd.f32 %v1191_v61, %v2544_v51  ;;  %v1410_v53 = vsel %vm413_vm0, %v1380_v36, 0.0  ;;  %1863 = vrcp.f32 %v1366_v3 }
 0x2ce   :  { %v2427_v47 = vadd.f32 0.0001, %v1224_v4  ;;  %v1319_v32 = vadd.f32 0.0001, %v1303_v15  ;;  %v1411_v2 = vadd.f32 %v1410_v53, %v1409_v57  ;;  %v2547_v38 = vsub.f32 %v2546_v0, %v2269_v24  ;;  %v2551_v57 = vld [vmem:[#allocation12_spill] sm:$0xff] }
 0x2cf   :  { %v1351_v49 = vadd.f32 0.0009, %v1335_v48  ;;  %v1368_v19 = vmul.f32 %v1352_v29, %v1320_v35  ;;  %v1252_v16 = vmul.f32 2.0, %v1204_v54  ;;  %v1239_v8 = vadd.f32 0.0001, %v1223_v10 }
 0x2d0   :  { %v1338_v40 = vadd.f32 %v1194_v9, %v2547_v38  ;;  %v1162_v22 = vmul.f32 %v1749_v39, %v2548_v41  ;;  %v1193_v6 = vsub.f32 %v2549_v45, %v1145_v50  ;;  %v1322_v14 = vadd.f32 0.0001, %v1306_v20 }
 0x2d1   :  { %v1367_v30 = vmul.f32 %v1351_v49, %v1319_v32  ;;  %v1268_v13 = vadd.f32 0.0009, %v1252_v16  ;;  %v1305_v56 = vadd.f32 %v1145_v50, %v2550_v62  ;;  %v1161_v61 = vmul.f32 %v850_v25, %v2551_v57 }
 0x2d2   :  { %v1354_v3 = vadd.f32 0.0009, %v1338_v40  ;;  %v2553_v24 = vsub.f32 %v2552_v43, %v2550_v62  ;;  %v1203_v58 = vsub.f32 %v2395_v1, %v2353_v63  ;;  %v1821_v21 = vpop.f32.mrf.mxu1  ;;  %v1413_v36 = vadd.f32 %v1412_v28, %v1411_v2  ;;  %v85_v2 = vpop.permute.xlu1 %84 }
 0x2d3   :  { %1865 = vrcp.f32 %v1367_v30  ;;  %v1321_v15 = vadd.f32 0.0001, %v1305_v56  ;;  %v1860_v10 = vpop.eup %1859  ;;  %v1206_v51 = vsub.f32 %v2402_v7, %v2362_v59  ;;  %v1205_v25 = vsub.f32 %v1070_v52, %v2382_v42 }
 0x2d4   :  { %v1337_v4 = vadd.f32 %v1193_v6, %v2553_v24  ;;  %1867 = vrcp.f32 %v1368_v19  ;;  %v1370_v39 = vmul.f32 %v1354_v3, %v1322_v14  ;;  %v1251_v29 = vmul.f32 2.0, %v1203_v58  ;;  %v1090_v28 = vpop.f32.mrf.mxu1 }
 0x2d5   :  { %v1284_v48 = vmul.f32 %v1268_v13, %v2370_v34  ;;  %v1208_v23 = vsub.f32 %v1818_v18, %v2400_v33  ;;  %v1207_v63 = vsub.f32 %v1080_v26, %v2405_v12  ;;  %v1254_v53 = vmul.f32 2.0, %v1206_v51  ;;  %v2555_v13 = vld [vmem:[#allocation19_spill] sm:$0xff]  ;;  %v2558_v51 = vld [vmem:[#allocation22_spill] sm:$0xff] }
 0x2d6   :  { %v1353_v35 = vadd.f32 0.0009, %v1337_v4  ;;  %1869 = vrcp.f32 %v1370_v39  ;;  %v1267_v9 = vadd.f32 0.0009, %v1251_v29  ;;  %v1253_v20 = vmul.f32 2.0, %v1205_v25 }
 0x2d7   :  { %v1386_v54 = vmul.f32 %v1858_v55, %v1284_v48  ;;  %v1256_v50 = vmul.f32 2.0, %v1208_v23  ;;  %v1255_v32 = vmul.f32 2.0, %v1207_v63  ;;  %v1210_v49 = vsub.f32 %v1821_v21, %v1162_v22 }
 0x2d8   :  { %v1369_v1 = vmul.f32 %v1353_v35, %v1321_v15  ;;  %v1862_v59 = vpop.eup %1861  ;;  %v1283_v42 = vmul.f32 %v1267_v9, %v2372_v46  ;;  %v1270_v7 = vadd.f32 0.0009, %v1254_v53  ;;  %v1269_v34 = vadd.f32 0.0009, %v1253_v20  ;;  %v2556_v15 = vld [vmem:[#allocation21_spill] sm:$0xff] }
 0x2d9   :  { %v1272_v52 = vadd.f32 0.0009, %v1256_v50  ;;  %v1271_v33 = vadd.f32 0.0009, %v1255_v32  ;;  %v1258_v18 = vmul.f32 2.0, %v1210_v49  ;;  %v1209_v12 = vsub.f32 %v1090_v28, %v1161_v61 }
 0x2da   :  { %1871 = vrcp.f32 %v1369_v1  ;;  %v1384_v19 = vmul.f32 %v1860_v10, %v1283_v42  ;;  %v1286_v0 = vmul.f32 %v1270_v7, %v2390_v44  ;;  %v1285_v38 = vmul.f32 %v1269_v34, %v2410_v31  ;;  %v1824_v55 = vpop.f32.mrf.mxu1  ;;  %v1864_v30 = vpop.eup %1863 }
 0x2db   :  { %v89_v16 = vsel %vm2185_vm14, %v85_v2, 0.0  ;;  %v1226_v41 = vmul.f32 2.0, %v1162_v22  ;;  %v1416_v45 = vsel %vm413_vm0, %v1386_v54, 0.0  ;;  %v1225_v46 = vmul.f32 2.0, %v1161_v61 }
 0x2dc   :  { %v1257_v6 = vmul.f32 2.0, %v1209_v12  ;;  %v1414_v26 = vsel %vm413_vm0, %v1384_v19, 0.0  ;;  %v1388_v14 = vmul.f32 %v1862_v59, %v1285_v38  ;;  %v1287_v3 = vmul.f32 %v1271_v33, %v1239_v8  ;;  %v1100_v56 = vpop.f32.mrf.mxu1  ;;  %v2557_v8 = vld [vmem:[#allocation17_spill] sm:$0xff]  ;;  %v2561_v38 = vld [vmem:[#allocation18_spill] sm:$0xff] }
 0x2dd   :  { %v1212_v62 = vsub.f32 %v1824_v55, %v2555_v13  ;;  %v1415_v44 = vadd.f32 %v1414_v26, %v1413_v36  ;;  %v1288_v31 = vmul.f32 %v1272_v52, %v2427_v47  ;;  %v1274_v57 = vadd.f32 0.0009, %v1258_v18  ;;  %v2559_v36 = vld [vmem:[#allocation2_spill] sm:$0xff]  ;;  %v2560_v18 = vld [vmem:[#allocation23_spill] sm:$0xff] }
 0x2de   :  { %v92_v43 = vsel %vm90_vm1, %v89_v16, 0.0  ;;  %v1390_v24 = vmul.f32 %v1864_v30, %v1286_v0  ;;  %v1418_v22 = vsel %vm413_vm0, %v1388_v14, 0.0  ;;  %v1273_v4 = vadd.f32 0.0009, %v1257_v6 }
 0x2df   :  { %v1260_v58 = vmul.f32 2.0, %v1212_v62  ;;  %v1242_v21 = vadd.f32 0.0001, %v1226_v41  ;;  %v1417_v39 = vadd.f32 %v1416_v45, %v1415_v44  ;;  %v1211_v10 = vsub.f32 %v1100_v56, %v2556_v15 }
 0x2e0   :  { %v1866_v61 = vpop.eup %1865  ;;  %v93_v35 = vadd.f32 %v92_v43, %v2557_v8  ;;  %v1165_v25 = vmul.f32 %v2559_v36, %v2558_v51  ;;  %1873 = vrcp.f32 %v2340_v17  ;;  %v1241_v47 = vadd.f32 0.0001, %v1225_v46 }
 0x2e1   :  { %v1868_v29 = vpop.eup %1867  ;;  %v1392_v48 = vmul.f32 %v1866_v61, %v1287_v3  ;;  %v1419_v23 = vadd.f32 %v1418_v22, %v1417_v39  ;;  %v1290_v63 = vmul.f32 %v1274_v57, %v1242_v21  ;;  %v1276_v1 = vadd.f32 0.0009, %v1260_v58 }
 0x2e2   :  { %v1259_v9 = vmul.f32 2.0, %v1211_v10  ;;  %94 = vadd.xlane.f32.xlu1 %v93_v35  ;;  %v1420_v20 = vsel %vm413_vm0, %v1390_v24, 0.0  ;;  %v1394_v28 = vmul.f32 %v1868_v29, %v1288_v31  ;;  %v1289_v50 = vmul.f32 %v1273_v4, %v1241_v47  ;;  %v1827_v32 = vpop.f32.mrf.mxu1 }
 0x2e3   :  { %v1870_v53 = vpop.eup %1869  ;;  %v1422_v54 = vsel %vm413_vm0, %v1392_v48, 0.0  ;;  %v1243_v49 = vadd.f32 0.0001, %v2301_v37  ;;  %v1421_v2 = vadd.f32 %v1420_v20, %v1419_v23  ;;  %v1214_v17 = vsub.f32 %v1827_v32, %v2304_v27 }
 0x2e4   :  { %v1275_v59 = vadd.f32 0.0009, %v1259_v9  ;;  %v1230_v42 = vmul.f32 2.0, %v2304_v27  ;;  %v1229_v7 = vmul.f32 2.0, %v1165_v25  ;;  %v1110_v34 = vpop.f32.mrf.mxu1  ;;  %v1292_v12 = vmul.f32 %v1276_v1, %v2560_v18 }
 0x2e5   :  { %v1423_v33 = vadd.f32 %v1422_v54, %v1421_v2  ;;  %v1262_v0 = vmul.f32 2.0, %v1214_v17  ;;  %v1424_v55 = vsel %vm413_vm0, %v1394_v28, 0.0  ;;  %v1398_v40 = vmul.f32 %v1870_v53, %v1290_v63 }
 0x2e6   :  { %v1291_v19 = vmul.f32 %v1275_v59, %v1243_v49  ;;  %123 = vadd.xlane.f32.xlu1 %v2561_v38  ;;  %v1213_v16 = vsub.f32 %v1110_v34, %v1165_v25  ;;  %v1246_v27 = vadd.f32 0.0001, %v1230_v42  ;;  %v1245_v26 = vadd.f32 0.0001, %v1229_v7 }
 0x2e7   :  { %v1872_v52 = vpop.eup %1871  ;;  %v1425_v30 = vadd.f32 %v1424_v55, %v1423_v33  ;;  %v1278_v45 = vadd.f32 0.0009, %v1262_v0  ;;  %v1402_v3 = vmul.f32 %v2355_v60, %v1292_v12  ;;  %v1428_v13 = vsel %vm413_vm0, %v1398_v40, 0.0 }
 0x2e8   :  { %v1396_v37 = vmul.f32 %v1872_v52, %v1289_v50  ;;  %v1400_v41 = vmul.f32 %v2358_v5, %v1291_v19  ;;  %v1261_v6 = vmul.f32 2.0, %v1213_v16  ;;  %v2562_v52 = vlaneseq }
 0x2e9   :  { %v1294_v56 = vmul.f32 %v1278_v45, %v1246_v27  ;;  %v1432_v4 = vsel %vm413_vm0, %v1402_v3, 0.0 }
 0x2ea   :  { %v1426_v46 = vsel %vm413_vm0, %v1396_v37, 0.0  ;;  %v1430_v62 = vsel %vm413_vm0, %v1400_v41, 0.0  ;;  %v1277_v44 = vadd.f32 0.0009, %v1261_v6  ;;  %v1448_v33 = vshrl.u32 %v2562_v52, 7 }
 0x2eb   :  { %v1427_v14 = vadd.f32 %v1426_v46, %v1425_v30  ;;  %v1406_v22 = vmul.f32 %v2387_v11, %v1294_v56 }
 0x2ec   :  { %v1293_v57 = vmul.f32 %v1277_v44, %v1245_v26  ;;  %v45_v15 = vpop.xlane.xlu1 %44  ;;  %vm1452_vm2 = vcmp.eq.s32.totalorder %v1448_v33, 1  ;;  %vm1456_vm3 = vcmp.eq.s32.totalorder %v1448_v33, 2  ;;  %vm1460_vm4 = vcmp.eq.s32.totalorder %v1448_v33, 3 }
 0x2ed   :  { %v1429_v31 = vadd.f32 %v1428_v13, %v1427_v14  ;;  %v1874_v43 = vpop.eup %1873  ;;  %v1436_v60 = vsel %vm413_vm0, %v1406_v22, 0.0  ;;  %v46_v10 = vrot.slane %v45_v15, 4 }
 0x2ee   :  { %v1404_v5 = vmul.f32 %v1874_v43, %v1293_v57 }
 0x2ef   :  { %v1431_v24 = vadd.f32 %v1430_v62, %v1429_v31  ;;  %v47_v8 = vadd.f32 %v46_v10, %v45_v15 }
 0x2f0   :  { %v1434_v61 = vsel %vm413_vm0, %v1404_v5, 0.0  ;;  %vm1449_vm0 = vcmp.eq.s32.totalorder %v1448_v33, 0 }
 0x2f1   :  { %v1433_v58 = vadd.f32 %v1432_v4, %v1431_v24  ;;  %v48_v35 = vrot.slane %v47_v8, 2 }
 0x2f3   :  { %v1435_v21 = vadd.f32 %v1434_v61, %v1433_v58  ;;  %v49_v29 = vadd.f32 %v48_v35, %v47_v8 }
 0x2f5   :  { %v1437_v39 = vadd.f32 %v1436_v60, %v1435_v21  ;;  %v50_v51 = vrot.slane %v49_v29, 1 }
 0x2f7   :  { %1438 = vadd.xlane.f32.xlu1 %v1437_v39  ;;  %v51_v36 = vadd.f32 %v50_v51, %v49_v29 }
 0x2f9   :  { %1832 = vpush %v51_v36 }
 0x32a   :  { %s1833_s5 = spop %1832 }
 0x32b   :  { %v1450_v18 = vstv %s1833_s5 }
 0x32c   :  { %v1451_v19 = vsel %vm1449_vm0, %v1450_v18, 0.0 }
 0x36b   :  { %v95_v25 = vpop.xlane.xlu1 %94 }
 0x36c   :  { %v96_v11 = vrot.slane %v95_v25, 4 }
 0x36e   :  { %v97_v47 = vadd.f32 %v96_v11, %v95_v25 }
 0x36f   :  { %v124_v48 = vpop.xlane.xlu1 %123 }
 0x370   :  { %v98_v23 = vrot.slane %v97_v47, 2  ;;  %v125_v63 = vrot.slane %v124_v48, 4 }
 0x372   :  { %v126_v1 = vadd.f32 %v125_v63, %v124_v48  ;;  %v99_v9 = vadd.f32 %v98_v23, %v97_v47 }
 0x374   :  { %v127_v53 = vrot.slane %v126_v1, 2  ;;  %v100_v20 = vrot.slane %v99_v9, 1 }
 0x376   :  { %v101_v28 = vadd.f32 %v100_v20, %v99_v9  ;;  %v128_v54 = vadd.f32 %v127_v53, %v126_v1 }
 0x378   :  { %1834 = vpush %v101_v28  ;;  %v129_v50 = vrot.slane %v128_v54, 1 }
 0x37a   :  { %v130_v32 = vadd.f32 %v129_v50, %v128_v54 }
 0x37c   :  { %1836 = vpush %v130_v32 }
 0x380   :  { %v1439_v49 = vpop.xlane.xlu1 %1438 }
 0x381   :  { %v1440_v2 = vrot.slane %v1439_v49, 4 }
 0x383   :  { %v1441_v59 = vadd.f32 %v1440_v2, %v1439_v49 }
 0x385   :  { %v1442_v17 = vrot.slane %v1441_v59, 2 }
 0x387   :  { %v1443_v42 = vadd.f32 %v1442_v17, %v1441_v59 }
 0x389   :  { %v1444_v7 = vrot.slane %v1443_v42, 1 }
 0x38b   :  { %v1445_v34 = vadd.f32 %v1444_v7, %v1443_v42 }
 0x38d   :  { %1838 = vpush %v1445_v34 }
 0x3a9   :  { %s1835_s6 = spop %1834 }
 0x3aa   :  { %v1453_v12 = vstv %s1835_s6 }
 0x3ab   :  { %v1454_v0 = vsel %vm1452_vm2, %v1453_v12, 0.0 }
 0x3ac   :  { %v1455_v55 = vadd.f32 %v1454_v0, %v1451_v19 }
 0x3ad   :  { %s1837_s7 = spop %1836 }
 0x3ae   :  { %v1457_v38 = vstv %s1837_s7 }
 0x3af   :  { %v1458_v40 = vsel %vm1456_vm3, %v1457_v38, 0.0 }
 0x3b0   :  { %v1459_v37 = vadd.f32 %v1458_v40, %v1455_v55 }
 0x3be   :  { %s1839_s8 = spop %1838 }
 0x3bf   :  { %v1461_v16 = vstv %s1839_s8 }
 0x3c0   :  { %v1462_v30 = vsel %vm1460_vm4, %v1461_v16, 0.0 }
 0x3c1   :  { %v1463_v41 = vadd.f32 %v1462_v30, %v1459_v37 }
 0x3c3   :  { %1464 = vst [vmem:[%s2488_s4] sm:$0xff] %v1463_v41 }

</bundles_post_ra>
